<compile_context>
chip_gen: v7x
topology: tpu7x:2x2x1
jax: 0.10.0
libtpu: 0.0.40
codegen_flags: <defaults>
</compile_context>

<pallas_src>
import math

import jax
import jax.numpy as jnp
from jax.experimental import pallas as pl
from jax.experimental.pallas import tpu as pltpu

_INV_SQRT2 = 1.0 / math.sqrt(2.0)
_LANE = 128


def _round_up(n, m):
    return ((n + m - 1) // m) * m


def _pad_axis(a, axis, target):
    pad = target - a.shape[axis]
    if pad == 0:
        return a
    widths = [(0, 0)] * a.ndim
    widths[axis] = (0, pad)
    return jnp.pad(a, widths)


def _erf_approx(z):
    """erf via Abramowitz & Stegun 7.1.26 (|error| <= 1.5e-7), f32.

    Uses only exp / reciprocal / elementwise ops so it always lowers on TPU
    (exp goes to the EUP slot, the polynomial is a handful of VPU FMAs).
    """
    p = 0.3275911
    a1, a2, a3, a4, a5 = (0.254829592, -0.284496736, 1.421413741,
                          -1.453152027, 1.061405429)
    az = jnp.abs(z)
    t = 1.0 / (1.0 + p * az)
    poly = t * (a1 + t * (a2 + t * (a3 + t * (a4 + t * a5))))
    y = 1.0 - poly * jnp.exp(-az * az)
    return jnp.where(z >= 0.0, y, -y)


def _gelu_exact(h):
    # torch.nn.GELU default: 0.5 * x * (1 + erf(x / sqrt(2)))
    return 0.5 * h * (1.0 + _erf_approx(h * _INV_SQRT2))


def _mlp_kernel(x_ref, w1_ref, b1_ref, w2_ref, b2_ref, o_ref, acc_ref):
    """One (row-tile i, hidden-tile k) step of fused fc1 -> GELU -> fc2."""
    k = pl.program_id(1)

    @pl.when(k == 0)
    def _():
        acc_ref[...] = jnp.zeros_like(acc_ref)

    # fc1 partial: (tm, Cin) @ (Cin, th) + b1[th], f32 accumulation on the MXU.
    h = jnp.dot(x_ref[...], w1_ref[...], preferred_element_type=jnp.float32)
    h = h + b1_ref[...].astype(jnp.float32)
    h = _gelu_exact(h)
    # dropout with p=0.0 (module default) is the identity -> nothing to do.
    # fc2 partial accumulate: (tm, th) @ (th, Cout).
    acc_ref[...] += jnp.dot(h.astype(w2_ref.dtype), w2_ref[...],
                            preferred_element_type=jnp.float32)

    @pl.when(k == pl.num_programs(1) - 1)
    def _():
        o_ref[...] = (acc_ref[...] + b2_ref[...].astype(jnp.float32)
                      ).astype(o_ref.dtype)


def mlp_pallas(x, w1, b1, w2, b2, *, tm=256, th=512, compute_dtype=None):
    """Fused MLP: GELU(x @ w1 + b1) @ w2 + b2.

    x: (..., C_in); w1: (C_in, H); b1: (H,); w2: (H, C_out); b2: (C_out,).
    compute_dtype: optional dtype (e.g. jnp.bfloat16) for the MXU inputs;
    accumulation stays f32, output dtype matches x.
    """
    orig_shape = x.shape
    out_dtype = x.dtype
    c_in = orig_shape[-1]
    hidden = w1.shape[1]
    c_out = w2.shape[1]
    assert w1.shape[0] == c_in and w2.shape[0] == hidden
    assert b1.shape == (hidden,) and b2.shape == (c_out,)

    x2d = x.reshape(-1, c_in)
    m = x2d.shape[0]

    if compute_dtype is not None:
        x2d = x2d.astype(compute_dtype)
        w1 = w1.astype(compute_dtype)
        w2 = w2.astype(compute_dtype)

    # ---- lane/sublane-friendly zero padding (does not change the result) ----
    tm_eff = min(tm, _round_up(m, 8))           # ragged / small-M handling
    m_pad = _round_up(m, tm_eff)
    c_in_pad = _round_up(c_in, _LANE)
    c_out_pad = _round_up(c_out, _LANE)
    th_eff = min(th, _round_up(hidden, _LANE))  # hidden (reduction) tile
    hidden_pad = _round_up(hidden, th_eff)

    x2d = _pad_axis(_pad_axis(x2d, 0, m_pad), 1, c_in_pad)
    w1p = _pad_axis(_pad_axis(w1, 0, c_in_pad), 1, hidden_pad)
    b1p = _pad_axis(b1.reshape(1, hidden), 1, hidden_pad)
    w2p = _pad_axis(_pad_axis(w2, 0, hidden_pad), 1, c_out_pad)
    b2p = _pad_axis(b2.reshape(1, c_out), 1, c_out_pad)

    grid = (m_pad // tm_eff, hidden_pad // th_eff)

    # VMEM budget: double-buffered I/O tiles + the f32 accumulator.
    itm = x2d.dtype.itemsize
    io_tile_bytes = (tm_eff * c_in_pad + c_in_pad * th_eff + th_eff
                     + th_eff * c_out_pad + c_out_pad
                     + tm_eff * c_out_pad) * itm
    vmem_needed = 2 * io_tile_bytes + tm_eff * c_out_pad * 4
    vmem_limit = int(min(max(int(vmem_needed * 1.25), 32 * 2**20), 64 * 2**20))

    flops = 2 * m_pad * (c_in_pad * hidden_pad + hidden_pad * c_out_pad)
    bytes_accessed = ((x2d.size + w1p.size + b1p.size + w2p.size + b2p.size)
                      * itm + m_pad * c_out_pad * jnp.dtype(out_dtype).itemsize)

    out2d = pl.pallas_call(
        _mlp_kernel,
        out_shape=jax.ShapeDtypeStruct((m_pad, c_out_pad), out_dtype),
        grid_spec=pltpu.PrefetchScalarGridSpec(
            num_scalar_prefetch=0,
            grid=grid,
            in_specs=[
                pl.BlockSpec((tm_eff, c_in_pad), lambda i, k: (i, 0)),   # x
                pl.BlockSpec((c_in_pad, th_eff), lambda i, k: (0, k)),   # w1
                pl.BlockSpec((1, th_eff), lambda i, k: (0, k)),          # b1
                pl.BlockSpec((th_eff, c_out_pad), lambda i, k: (k, 0)),  # w2
                pl.BlockSpec((1, c_out_pad), lambda i, k: (0, 0)),       # b2
            ],
            out_specs=pl.BlockSpec((tm_eff, c_out_pad), lambda i, k: (i, 0)),
            scratch_shapes=[pltpu.VMEM((tm_eff, c_out_pad), jnp.float32)],
        ),
        compiler_params=pltpu.CompilerParams(
            dimension_semantics=("parallel", "arbitrary"),
            vmem_limit_bytes=vmem_limit,
        ),
        cost_estimate=pl.CostEstimate(
            flops=int(flops),
            transcendentals=int(m_pad * hidden_pad),
            bytes_accessed=int(bytes_accessed)),
    )(x2d, w1p, b1p, w2p, b2p)

    return out2d[:m, :c_out].reshape(*orig_shape[:-1], c_out)


def _reference_mlp(x, w1, b1, w2, b2):
    hi = jax.lax.Precision.HIGHEST
    h = jnp.dot(x, w1, precision=hi) + b1
    h = 0.5 * h * (1.0 + jax.lax.erf(h * _INV_SQRT2))
    return jnp.dot(h, w2, precision=hi) + b2


if __name__ == "__main__":
    # Small demo consistent with Mlp(in_features=96, hidden_features=256):
    # exercises row-tile sizing (200 tokens), lane padding (96 -> 128) and the
    # hidden-dim reduction loop (256 hidden split into two th=128 steps).
    B, N = 2, 100
    in_features = 96
    hidden_features = 256
    out_features = in_features  # module default

    key = jax.random.PRNGKey(0)
    kx, kw1, kb1, kw2, kb2 = jax.random.split(key, 5)

    x = jax.random.normal(kx, (B, N, in_features), dtype=jnp.float32)

    # nn.Linear stores weight as (out, in); kernel expects (in, out).
    bound1 = 1.0 / math.sqrt(in_features)
    w1 = jax.random.uniform(kw1, (in_features, hidden_features), jnp.float32,
                            minval=-bound1, maxval=bound1)
    b1 = jax.random.uniform(kb1, (hidden_features,), jnp.float32,
                            minval=-bound1, maxval=bound1)
    bound2 = 1.0 / math.sqrt(hidden_features)
    w2 = jax.random.uniform(kw2, (hidden_features, out_features), jnp.float32,
                            minval=-bound2, maxval=bound2)
    b2 = jax.random.uniform(kb2, (out_features,), jnp.float32,
                            minval=-bound2, maxval=bound2)

    out = mlp_pallas(x, w1, b1, w2, b2, tm=256, th=128)
    out = jax.block_until_ready(out)

    ref = _reference_mlp(x, w1, b1, w2, b2)
    assert out.shape == (B, N, out_features)
    # Tolerance covers MXU f32 (multi-pass bf16) matmul rounding + the 1.5e-7
    # erf polynomial; a broken kernel would be orders of magnitude farther off.
    assert jnp.allclose(out, ref, atol=2e-3, rtol=2e-3), "mismatch vs reference"

    print("KERNEL_OK")
</pallas_src>

<mosaic_0001>
module attributes {stable_mosaic.version = 11 : i64} {
  func.func @_mlp_kernel(%arg0: i32, %arg1: i32, %arg2: memref<200x128xf32, #tpu.memory_space<vmem>>, %arg3: memref<128x128xf32, #tpu.memory_space<vmem>>, %arg4: memref<1x128xf32, #tpu.memory_space<vmem>>, %arg5: memref<128x128xf32, #tpu.memory_space<vmem>>, %arg6: memref<1x128xf32, #tpu.memory_space<vmem>>, %arg7: memref<200x128xf32, #tpu.memory_space<vmem>>, %arg8: memref<200x128xf32, #tpu.memory_space<vmem>>) attributes {dimension_semantics = [#tpu.dimension_semantics<parallel>, #tpu.dimension_semantics<arbitrary>], iteration_bounds = array<i64: 1, 2>, scalar_prefetch = 0 : i64, scratch_operands = 1 : i64, tpu.core_type = #tpu.core_type<tc>, window_params = [{transform_indices = @transform_0, window_bounds = array<i64: 200, 128>}, {transform_indices = @transform_1, window_bounds = array<i64: 128, 128>}, {transform_indices = @transform_2, window_bounds = array<i64: 1, 128>}, {transform_indices = @transform_3, window_bounds = array<i64: 128, 128>}, {pipeline_mode = #tpu.pipeline_mode<synchronous>, transform_indices = @transform_4, window_bounds = array<i64: 1, 128>}, {transform_indices = @transform_5, window_bounds = array<i64: 200, 128>}]} {
    %c0_i32 = arith.constant 0 : i32
    %0 = arith.cmpi eq, %arg1, %c0_i32 : i32
    %1 = arith.extui %0 : i1 to i32
    %c0_i32_0 = arith.constant 0 : i32
    %2 = arith.cmpi ne, %1, %c0_i32_0 : i32
    scf.if %2 {
      %cst_29 = arith.constant 0.000000e+00 : f32
      %57 = vector.broadcast %cst_29 : f32 to vector<200x128xf32>
      %c0_30 = arith.constant 0 : index
      %c0_31 = arith.constant 0 : index
      %58 = vector.load %arg8[%c0_30, %c0_31] : memref<200x128xf32, #tpu.memory_space<vmem>>, vector<200x128xf32>
      tpu.vector_store %arg8[%c0_30, %c0_31], %57 {strides = array<i32>} : memref<200x128xf32, #tpu.memory_space<vmem>>, vector<200x128xf32>,
    } else {
    }
    %c0 = arith.constant 0 : index
    %c0_1 = arith.constant 0 : index
    %3 = vector.load %arg2[%c0, %c0_1] : memref<200x128xf32, #tpu.memory_space<vmem>>, vector<200x128xf32>
    %c0_2 = arith.constant 0 : index
    %c0_3 = arith.constant 0 : index
    %4 = vector.load %arg3[%c0_2, %c0_3] : memref<128x128xf32, #tpu.memory_space<vmem>>, vector<128x128xf32>
    %cst = arith.constant dense<0.000000e+00> : vector<200x128xf32>
    %5 = tpu.matmul %3, %4, %cst {dimension_numbers = #tpu.dot_dimension_numbers<[1], [0], [0], [1], [0, 0, 1, 1], [], []>} : vector<200x128xf32>, vector<128x128xf32>, vector<200x128xf32> -> vector<200x128xf32>
    %c0_4 = arith.constant 0 : index
    %c0_5 = arith.constant 0 : index
    %6 = vector.load %arg4[%c0_4, %c0_5] : memref<1x128xf32, #tpu.memory_space<vmem>>, vector<1x128xf32>
    %7 = vector.broadcast %6 : vector<1x128xf32> to vector<200x128xf32>
    %8 = arith.addf %5, %7 : vector<200x128xf32>
    %cst_6 = arith.constant 5.000000e-01 : f32
    %9 = vector.broadcast %cst_6 : f32 to vector<200x128xf32>
    %10 = arith.mulf %9, %8 : vector<200x128xf32>
    %cst_7 = arith.constant 0.707106769 : f32
    %11 = vector.broadcast %cst_7 : f32 to vector<200x128xf32>
    %12 = arith.mulf %8, %11 : vector<200x128xf32>
    %13 = math.absf %12 : vector<200x128xf32>
    %cst_8 = arith.constant 0.327591091 : f32
    %14 = vector.broadcast %cst_8 : f32 to vector<200x128xf32>
    %15 = arith.mulf %14, %13 : vector<200x128xf32>
    %cst_9 = arith.constant 1.000000e+00 : f32
    %16 = vector.broadcast %cst_9 : f32 to vector<200x128xf32>
    %17 = arith.addf %16, %15 : vector<200x128xf32>
    %cst_10 = arith.constant 1.000000e+00 : f32
    %18 = vector.broadcast %cst_10 : f32 to vector<200x128xf32>
    %19 = arith.divf %18, %17 : vector<200x128xf32>
    %cst_11 = arith.constant 1.06140542 : f32
    %20 = vector.broadcast %cst_11 : f32 to vector<200x128xf32>
    %21 = arith.mulf %19, %20 : vector<200x128xf32>
    %cst_12 = arith.constant -1.45315206 : f32
    %22 = vector.broadcast %cst_12 : f32 to vector<200x128xf32>
    %23 = arith.addf %22, %21 : vector<200x128xf32>
    %24 = arith.mulf %19, %23 : vector<200x128xf32>
    %cst_13 = arith.constant 1.42141378 : f32
    %25 = vector.broadcast %cst_13 : f32 to vector<200x128xf32>
    %26 = arith.addf %25, %24 : vector<200x128xf32>
    %27 = arith.mulf %19, %26 : vector<200x128xf32>
    %cst_14 = arith.constant -0.284496725 : f32
    %28 = vector.broadcast %cst_14 : f32 to vector<200x128xf32>
    %29 = arith.addf %28, %27 : vector<200x128xf32>
    %30 = arith.mulf %19, %29 : vector<200x128xf32>
    %cst_15 = arith.constant 0.254829586 : f32
    %31 = vector.broadcast %cst_15 : f32 to vector<200x128xf32>
    %32 = arith.addf %31, %30 : vector<200x128xf32>
    %33 = arith.mulf %19, %32 : vector<200x128xf32>
    %cst_16 = arith.constant 0.000000e+00 : f32
    %34 = vector.broadcast %cst_16 : f32 to vector<200x128xf32>
    %35 = arith.subf %34, %13 : vector<200x128xf32>
    %36 = arith.mulf %35, %13 : vector<200x128xf32>
    %37 = math.exp %36 : vector<200x128xf32>
    %38 = arith.mulf %33, %37 : vector<200x128xf32>
    %cst_17 = arith.constant 1.000000e+00 : f32
    %39 = vector.broadcast %cst_17 : f32 to vector<200x128xf32>
    %40 = arith.subf %39, %38 : vector<200x128xf32>
    %cst_18 = arith.constant 0.000000e+00 : f32
    %41 = vector.broadcast %cst_18 : f32 to vector<200x128xf32>
    %42 = arith.cmpf oge, %12, %41 : vector<200x128xf32>
    %cst_19 = arith.constant 0.000000e+00 : f32
    %43 = vector.broadcast %cst_19 : f32 to vector<200x128xf32>
    %44 = arith.subf %43, %40 : vector<200x128xf32>
    %45 = arith.select %42, %40, %44 : vector<200x128xi1>, vector<200x128xf32>
    %cst_20 = arith.constant 1.000000e+00 : f32
    %46 = vector.broadcast %cst_20 : f32 to vector<200x128xf32>
    %47 = arith.addf %46, %45 : vector<200x128xf32>
    %48 = arith.mulf %10, %47 : vector<200x128xf32>
    %c0_21 = arith.constant 0 : index
    %c0_22 = arith.constant 0 : index
    %49 = vector.load %arg8[%c0_21, %c0_22] : memref<200x128xf32, #tpu.memory_space<vmem>>, vector<200x128xf32>
    %c0_23 = arith.constant 0 : index
    %c0_24 = arith.constant 0 : index
    %50 = vector.load %arg5[%c0_23, %c0_24] : memref<128x128xf32, #tpu.memory_space<vmem>>, vector<128x128xf32>
    %cst_25 = arith.constant dense<0.000000e+00> : vector<200x128xf32>
    %51 = tpu.matmul %48, %50, %cst_25 {dimension_numbers = #tpu.dot_dimension_numbers<[1], [0], [0], [1], [0, 0, 1, 1], [], []>} : vector<200x128xf32>, vector<128x128xf32>, vector<200x128xf32> -> vector<200x128xf32>
    %52 = arith.addf %49, %51 : vector<200x128xf32>
    %c0_26 = arith.constant 0 : index
    %c0_27 = arith.constant 0 : index
    %53 = vector.load %arg8[%c0_26, %c0_27] : memref<200x128xf32, #tpu.memory_space<vmem>>, vector<200x128xf32>
    tpu.vector_store %arg8[%c0_26, %c0_27], %52 {strides = array<i32>} : memref<200x128xf32, #tpu.memory_space<vmem>>, vector<200x128xf32>,
    %c1_i32 = arith.constant 1 : i32
    %54 = arith.cmpi eq, %arg1, %c1_i32 : i32
    %55 = arith.extui %54 : i1 to i32
    %c0_i32_28 = arith.constant 0 : i32
    %56 = arith.cmpi ne, %55, %c0_i32_28 : i32
    scf.if %56 {
      %c0_29 = arith.constant 0 : index
      %c0_30 = arith.constant 0 : index
      %57 = vector.load %arg8[%c0_29, %c0_30] : memref<200x128xf32, #tpu.memory_space<vmem>>, vector<200x128xf32>
      %c0_31 = arith.constant 0 : index
      %c0_32 = arith.constant 0 : index
      %58 = vector.load %arg6[%c0_31, %c0_32] : memref<1x128xf32, #tpu.memory_space<vmem>>, vector<1x128xf32>
      %59 = vector.broadcast %58 : vector<1x128xf32> to vector<200x128xf32>
      %60 = arith.addf %57, %59 : vector<200x128xf32>
      %c0_33 = arith.constant 0 : index
      %c0_34 = arith.constant 0 : index
      %61 = vector.load %arg7[%c0_33, %c0_34] : memref<200x128xf32, #tpu.memory_space<vmem>>, vector<200x128xf32>
      tpu.vector_store %arg7[%c0_33, %c0_34], %60 {strides = array<i32>} : memref<200x128xf32, #tpu.memory_space<vmem>>, vector<200x128xf32>,
    } else {
    }
    return
  }
  func.func @transform_0(%arg0: i32, %arg1: i32) -> (i32, i32) {
    %c0_i32 = arith.constant 0 : i32
    %c0_i32_0 = arith.constant 0 : i32
    return %arg0, %c0_i32 : i32, i32
  }
  func.func @transform_1(%arg0: i32, %arg1: i32) -> (i32, i32) {
    %c0_i32 = arith.constant 0 : i32
    %c0_i32_0 = arith.constant 0 : i32
    return %c0_i32, %arg1 : i32, i32
  }
  func.func @transform_2(%arg0: i32, %arg1: i32) -> (i32, i32) {
    %c0_i32 = arith.constant 0 : i32
    %c0_i32_0 = arith.constant 0 : i32
    return %c0_i32, %arg1 : i32, i32
  }
  func.func @transform_3(%arg0: i32, %arg1: i32) -> (i32, i32) {
    %c0_i32 = arith.constant 0 : i32
    %c0_i32_0 = arith.constant 0 : i32
    return %arg1, %c0_i32 : i32, i32
  }
  func.func @transform_4(%arg0: i32, %arg1: i32) -> (i32, i32) {
    %c0_i32 = arith.constant 0 : i32
    %c0_i32_0 = arith.constant 0 : i32
    %c0_i32_1 = arith.constant 0 : i32
    return %c0_i32, %c0_i32_0 : i32, i32
  }
  func.func @transform_5(%arg0: i32, %arg1: i32) -> (i32, i32) {
    %c0_i32 = arith.constant 0 : i32
    %c0_i32_0 = arith.constant 0 : i32
    return %arg0, %c0_i32 : i32, i32
  }
}

</mosaic_0001>

<bundles_post_ra>
// kernel: tpu_custom_call.1
= control target key start
LH: loop header
LB: loop body
LE: loop exit
PB: predicated region body
PF: predicated region fallthrough
CT: control target
= control target key end

     0   :  { %10 = vsyncpa [#allocation4], 0  ;;  %s3506_s0 = inlined_call_operand.hbm [shape: f32[200,128], index: 0, kind: input, shape index: {}]   ;;  %s3507_s1 = inlined_call_operand.hbm [shape: f32[128,256], index: 1, kind: input, shape index: {}]   ;;  %s3508_s2 = inlined_call_operand.vmem [shape: f32[1,256], index: 2, kind: input, shape index: {}]   ;;  %s3509_s3 = inlined_call_operand.hbm [shape: f32[256,128], index: 3, kind: input, shape index: {}]   ;;  %s3510_s4 = inlined_call_operand.vmem [shape: f32[1,128], index: 4, kind: input, shape index: {}]   ;;  %s3511_s5 = inlined_call_operand.hbm [shape: f32[200,128], index: 5, kind: output, shape index: {}]  }
   0x1   :  { %11 = vsyncpa [#allocation7], 0 }
   0x2   :  { %13 = vsyncpa [#allocation7 + $0x1], 0 }
   0x3   :  { %14 = vsyncpa [#allocation5], 0  ;;  %s2519_s18 = smov 0   ;;  %s2521_s19 = smov 0  }
   0x4   :  { %s2523_s20 = smov 0   ;;  %s2525_s21 = smov 0  }
   0x5   :  { %s2527_s22 = smov 0   ;;  %s2529_s23 = smov 0  }
   0x6 LB: > { %s29_s24 = sadd.s32 1, %s2470_s22  ;;  %s65_s25 = sadd.s32 1, %s2462_s20  ;;  %s2474_s23 = sphi %s2529_s23, %s20_s23   ;;  %s2470_s22 = sphi %s2527_s22, %s3584_s22   ;;  %s2466_s21 = sphi %s2525_s21, %s3583_s21   ;;  %s2462_s20 = sphi %s2523_s20, %s3582_s20   ;;  %s2458_s19 = sphi %s2521_s19, %s3581_s19   ;;  %s2454_s18 = sphi %s2519_s18, %s3580_s18  }
   0x7   : > { %p30_p0 = scmp.ge.s32.totalorder %s29_s24, 2  ;;  %p72_p1 = scmp.ne.s32.totalorder %s2462_s20, %s2458_s19 }
   0x8   : > { %p73_p2 = scmp.eq.s32.totalorder %s2474_s23, 0  ;;  %p2139_p5 = scmp.lt.s32.totalorder %s2474_s23, 2 }
   0x9   : > { %s3586_s24 = smov (%p30_p0, %s29_s24), 0  ;;  %s220_s28 = sand.u32 1, %s2474_s23  }
   0xa   : > { %p2556_p3 = por %p73_p2, %p72_p1  ;;  %s62_s27 = ssub.s32 %s2470_s22, %s3586_s24 }
   0xb   : > { %p63_p4 = scmp.eq.s32.totalorder %s62_s27, 0  ;;  %s222_s29 = sand.u32 1, %s2462_s20  }
   0xc   : > { %s2568_s6 = sshll.u32 %s222_s29, 7  ;;  %s1754_s7 = sshll.u32 %s2470_s22, 7 }
   0xd   : > { %s2566_s30 = scalar_select %p63_p4, %s2462_s20, %s65_s25  }
   0xe   : > { %s2574_s10 = scalar_lea.hbm %s3507_s1, %s1754_s7  ;;  %s224_s11 = scalar_lea.vmem [#allocation6], %s2568_s6 }
   0xf   : > { %s230_s12 = sshll.u32 %s224_s11, 4  ;;  %p2581_p6 = pnand %p2139_p5, %p2556_p3  ;;  %s2577_s12 = int_to_ptr.vmem [resolvable:$true] %s230_s12 }
  0x10   : > { %s2585_s14 = scalar_lea.sflag [#allocation7], %s220_s28  ;;  %s2302_s15 = scalar_lea.hbm %s2574_s10, 2048 }
  0x11   : > { %p2303_p7 = scmp.ne.s32.totalorder %s2574_s10, %s2302_s15  ;;  %p2304_p8 = pneg %p2581_p6 }
  0x12   : > { %s2307_s25 = scalar_lea.hbm %s3507_s1, 4096  ;;  %p2308_p11 = scmp.lt.u32.totalorder %s2574_s10, %s3507_s1 }
  0x13   : > { %p2305_p9 = pnand %p2304_p8, %p2303_p7  ;;  %p2309_p12 = scmp.lt.u32.totalorder %s2307_s25, %s2302_s15 }
  0x14   : > { %p2311_p0 = scmp.lt.u32.totalorder %s2302_s15, %s2574_s10 }
  0x15   : > { %p2306_p10 = pneg %p2305_p9  ;;  %p2310_p13 = por %p2309_p12, %p2308_p11 }
  0x17   : > { %p2312_p1 = por %p2311_p0, %p2310_p13 }
  0x19   : > { %p2313_p2 = pnand %p2312_p1, %p2306_p10 }
  0x1b   : > { %2316 = shalt.err (!%p2313_p2)
}
  0x1c   : > { %s2317_s28 = scalar_lea.vmem %s2577_s12, 2048  ;;  %s2476_s29 = smov [#allocation6]  }
  0x1d   : > { %p2318_p3 = scmp.ne.s32.totalorder %s2577_s12, %s2317_s28  ;;  %s2322_s7 = sshll.u32 %s2476_s29, 4  ;;  %s2323_s7 = int_to_ptr.vmem [resolvable:$false] %s2322_s7 }
  0x1e   : > { %s2324_s8 = scalar_lea.vmem %s2323_s7, 4096  ;;  %p2325_p7 = scmp.lt.s32.totalorder %s2577_s12, %s2323_s7 }
  0x1f   : > { %p2320_p4 = pnand %p2318_p3, %p2304_p8  ;;  %p2326_p9 = scmp.lt.s32.totalorder %s2324_s8, %s2317_s28 }
  0x21   : > { %p2321_p5 = pneg %p2320_p4  ;;  %p2327_p11 = por %p2326_p9, %p2325_p7 }
  0x23   : > { %p2328_p12 = pnand %p2327_p11, %p2321_p5 }
  0x25   : > { %2331 = shalt.err (!%p2328_p12)
}
  0x26   : > { %s2477_s9 = smov 256   ;;  %s2478_s11 = smov 128  }
  0x27   : > { %s2479_s15 = smov 8   ;;  %s2616_s16 = sadd.s32 4294967295, %s2474_s23  }
  0x28   : > { %2134 = dma.hbm_to_vmem [thread:$0]  (!%p2581_p6), %s2574_s10, 2048, %s2577_s12, %s2585_s14, %s2477_s9, %s2478_s11, %s2479_s15  }
  0x29   : > { %p78_p10 = scmp.ne.s32.totalorder %s2458_s19, %s2454_s18  ;;  %p3512_p13 = scmp.eq.s32.totalorder %s2616_s16, 0 }
  0x2a   : > { %p1750_p0 = scmp.ge.s32.totalorder %s2474_s23, 1  ;;  %p188_p1 = scmp.lt.s32.totalorder %s2474_s23, 3 }
  0x2b   : > { %p2625_p2 = por %p3512_p13, %p78_p10  ;;  %s2480_s10 = smov [#allocation3]  }
  0x2c   : > { %p2629_p3 = pnand %p1750_p0, %p188_p1  ;;  %s203_s12 = sshll.u32 %s2480_s10, 4  ;;  %s2633_s12 = int_to_ptr.vmem [resolvable:$true] %s203_s12 }
  0x2d   : > { %s3536_s17 = scalar_select %p2625_p2, 1, 0 }
  0x2e   : > { %s3537_s25 = scalar_select %p2629_p3, 1, 0 }
  0x2f   : > { %p2127_p4 = pneg %p2629_p3  ;;  %s1770_s18 = sshll.u32 %s2470_s22, 11 }
  0x30   : > { %s2641_s28 = scalar_lea.hbm %s3509_s3, %s1770_s18  ;;  %s250_s29 = scalar_lea.vmem [#allocation8], %s2568_s6 }
  0x31   : > { %s257_s7 = sshll.u32 %s250_s29, 4  ;;  %p2646_p5 = pnand %p2127_p4, %p3512_p13  ;;  %s2650_s7 = int_to_ptr.vmem [resolvable:$true] %s257_s7 }
  0x32   : > { %s2332_s9 = scalar_lea.hbm %s2641_s28, 2048  ;;  %s2337_s26 = scalar_lea.hbm %s3509_s3, 4096 }
  0x33   : > { %p2333_p7 = scmp.ne.s32.totalorder %s2641_s28, %s2332_s9  ;;  %p2338_p12 = scmp.lt.u32.totalorder %s2641_s28, %s3509_s3 }
  0x34   : > { %p2339_p10 = scmp.lt.u32.totalorder %s2337_s26, %s2332_s9  ;;  %p2341_p1 = scmp.lt.u32.totalorder %s2332_s9, %s2641_s28 }
  0x35   : > { %p2335_p9 = pnand %p2333_p7, %p2304_p8 }
  0x36   : > { %p2340_p0 = por %p2339_p10, %p2338_p12 }
  0x37   : > { %p2336_p11 = pneg %p2335_p9 }
  0x38   : > { %p2342_p4 = por %p2341_p1, %p2340_p0 }
  0x3a   : > { %p2343_p13 = pnand %p2342_p4, %p2336_p11 }
  0x3c   : > { %2346 = shalt.err (!%p2343_p13)
}
  0x3d   : > { %s2347_s29 = scalar_lea.vmem %s2650_s7, 2048  ;;  %s2481_s10 = smov [#allocation8]  }
  0x3e   : > { %p2348_p7 = scmp.ne.s32.totalorder %s2650_s7, %s2347_s29  ;;  %s2352_s18 = sshll.u32 %s2481_s10, 4  ;;  %s2353_s18 = int_to_ptr.vmem [resolvable:$false] %s2352_s18 }
  0x3f   : > { %s2354_s27 = scalar_lea.vmem %s2353_s18, 4096  ;;  %p2355_p3 = scmp.lt.s32.totalorder %s2650_s7, %s2353_s18 }
  0x40   : > { %p2350_p9 = pnand %p2348_p7, %p2304_p8  ;;  %p2356_p12 = scmp.lt.s32.totalorder %s2354_s27, %s2347_s29 }
  0x42   : > { %p2351_p2 = pneg %p2350_p9  ;;  %p2357_p10 = por %p2356_p12, %p2355_p3 }
  0x44   : > { %p2358_p0 = pnand %p2357_p10, %p2351_p2 }
  0x46   : > { %2361 = shalt.err (!%p2358_p0)
}
  0x47   : > { %2137 = dma.hbm_to_vmem [thread:$0]  (!%p2581_p6), %s2641_s28, 2048, %s2650_s7, %s2585_s14, %s2478_s11, %s2478_s11, %s2479_s15  }
  0x48   : > { %s2362_s6 = scalar_lea.hbm %s3506_s0, 3200  ;;  %p2364_p13 = pneg %p2646_p5 }
  0x49   : > { %p2363_p8 = scmp.ne.s32.totalorder %s3506_s0, %s2362_s6  ;;  %p2369_p11 = scmp.lt.u32.totalorder %s2362_s6, %s3506_s0 }
  0x4b   : > { %p2365_p2 = pnand %p2364_p13, %p2363_p8 }
  0x4d   : > { %p2366_p3 = pneg %p2365_p2 }
  0x4f   : > { %p2371_p1 = pnand %p2369_p11, %p2366_p3 }
  0x51   : > { %2374 = shalt.err (!%p2371_p1)
}
  0x52   : > { %s2375_s14 = scalar_lea.vmem %s2633_s12, 3200  ;;  %p2383_p9 = scmp.lt.s32.totalorder %s2633_s12, %s2633_s12 }
  0x53   : > { %p2376_p6 = scmp.ne.s32.totalorder %s2633_s12, %s2375_s14  ;;  %p2384_p12 = scmp.lt.s32.totalorder %s2375_s14, %s2375_s14 }
  0x55   : > { %p2378_p4 = pnand %p2376_p6, %p2364_p13  ;;  %p2385_p10 = por %p2384_p12, %p2383_p9 }
  0x57   : > { %p2379_p7 = pneg %p2378_p4 }
  0x59   : > { %p2386_p0 = pnand %p2385_p10, %p2379_p7 }
  0x5b   : > { %2389 = shalt.err (!%p2386_p0)
}
  0x5c   : > { %2130 = dma.hbm_to_vmem [thread:$0]  (!%p2646_p5), %s3506_s0, 3200, %s2633_s12, [#allocation4], %s2478_s11, %s2478_s11, %s2479_s15  }
  0x5d   : > { %p3539_p8 = scmp.ne.s32.totalorder %s3537_s25, 0 }
  0x5f   : > { %269 = sbr.rel (%p3539_p8) target bundleno = 820 (0x334), region = 40 }
  0x66   : > { %p3540_p13 = scmp.eq.s32.totalorder %s2616_s16, 0 }
  0x68   : > { %2441 = dma.done.wait (%p3540_p13), [#allocation4], 3200   ;;  %p3541_p2 = pmov %p3540_p13 }
  0x69   : > { %s275_s8 = sand.u32 1, %s2616_s16   ;;  %s277_s27 = sand.u32 1, %s2458_s19  }
  0x6a   : > { %2443 = vsyncadd (%p3541_p2), [#allocation4], 4294964096  ;;  %s1760_s9 = sshll.u32 %s277_s27, 7  ;;  %s276_s26 = scalar_lea.sflag [#allocation7], %s275_s8 }
  0x6b   : > { %s2711_s6 = scalar_lea.vmem [#allocation6], %s1760_s9  ;;  %p3542_p3 = scmp.ne.s32.totalorder %s3536_s17, 0 }
  0x6d   : > { %2445 = dma.done.wait (%p3542_p3), %s276_s26, 4096  }
  0x6e   : > { %2447 = vsyncadd (%p3542_p3), %s276_s26, 4294963200  ;;  %p319_p5 = scmp.lt.s32.totalorder %s2466_s21, 1  ;;  %s2725_s10 = scalar_lea.vmem [#allocation8], %s1760_s9 }
  0x6f   : > { %p1762_p11 = scmp.ne.s32.totalorder %s2466_s21, 0 }
  0x70   : > { %s2719_s11 = scalar_select %p319_p5, %s2466_s21, 1 }
  0x71   : > { %327 = sbr.rel (%p1762_p11) target bundleno = 127 (0x7f), region = 56  ;;  %v2482_v0 = vmov (!%p1762_p11), 0.0  }
  0x72   : > { %s321_s12 = scalar_lea.vmem %s3508_s2, %s2719_s11  ;;  %328 = vst [vmem:[#allocation2] sm:$0xff] (!%p1762_p11), %v2482_v0  ;;  %329 = vst [vmem:[#allocation2 + $0x8] sm:$0xff] (!%p1762_p11), %v2482_v0 }
  0x73   : > { %330 = vst [vmem:[#allocation2 + $0x10] sm:$0xff] (!%p1762_p11), %v2482_v0  ;;  %331 = vst [vmem:[#allocation2 + $0x18] sm:$0xff] (!%p1762_p11), %v2482_v0 }
  0x74   : > { %332 = vst [vmem:[#allocation2 + $0x20] sm:$0xff] (!%p1762_p11), %v2482_v0  ;;  %333 = vst [vmem:[#allocation2 + $0x28] sm:$0xff] (!%p1762_p11), %v2482_v0 }
  0x75   : > { %334 = vst [vmem:[#allocation2 + $0x30] sm:$0xff] (!%p1762_p11), %v2482_v0  ;;  %335 = vst [vmem:[#allocation2 + $0x38] sm:$0xff] (!%p1762_p11), %v2482_v0 }
  0x76   : > { %336 = vst [vmem:[#allocation2 + $0x40] sm:$0xff] (!%p1762_p11), %v2482_v0  ;;  %337 = vst [vmem:[#allocation2 + $0x48] sm:$0xff] (!%p1762_p11), %v2482_v0 }
  0x77   : > { %338 = vst [vmem:[#allocation2 + $0x50] sm:$0xff] (!%p1762_p11), %v2482_v0  ;;  %339 = vst [vmem:[#allocation2 + $0x58] sm:$0xff] (!%p1762_p11), %v2482_v0 }
  0x78   : > { %340 = vst [vmem:[#allocation2 + $0x60] sm:$0xff] %v2482_v0  ;;  %341 = vst [vmem:[#allocation2 + $0x68] sm:$0xff] %v2482_v0 }
  0x79   : > { %342 = vst [vmem:[#allocation2 + $0x70] sm:$0xff] %v2482_v0  ;;  %343 = vst [vmem:[#allocation2 + $0x78] sm:$0xff] %v2482_v0 }
  0x7a   : > { %344 = vst [vmem:[#allocation2 + $0x80] sm:$0xff] %v2482_v0  ;;  %345 = vst [vmem:[#allocation2 + $0x88] sm:$0xff] %v2482_v0 }
  0x7b   : > { %346 = vst [vmem:[#allocation2 + $0x90] sm:$0xff] %v2482_v0  ;;  %347 = vst [vmem:[#allocation2 + $0x98] sm:$0xff] %v2482_v0 }
  0x7c   : > { %348 = vst [vmem:[#allocation2 + $0xa0] sm:$0xff] %v2482_v0  ;;  %349 = vst [vmem:[#allocation2 + $0xa8] sm:$0xff] %v2482_v0 }
  0x7d   : > { %350 = vst [vmem:[#allocation2 + $0xb0] sm:$0xff] %v2482_v0  ;;  %351 = vst [vmem:[#allocation2 + $0xb8] sm:$0xff] %v2482_v0 }
  0x7e   : > { %352 = vst [vmem:[#allocation2 + $0xc0] sm:$0xff] %v2482_v0 }
  0x7f PF: > { %v378_v1 = vld [vmem:[%s2711_s6] sm:$0xff]  ;;  %v379_v2 = vld [vmem:[%s2711_s6 + $0x8] sm:$0xff]  ;;  %v380_v3 = vld [vmem:[%s2711_s6 + $0x10] sm:$0xff]  ;;  %v2483_v4 = vmov 0.0|0.0   ;;  %vm2484_vm0 = vmmov 0   ;;  %v3515_v7 = vmov 0.0  }
  0x80   : > { %2067 = vmatprep.subr.bf16.mxu0 %v2483_v4  ;;  %v2068_v5 = vpack.c.bf16 %v379_v2, %v378_v1  ;;  %v381_v6 = vld [vmem:[%s2711_s6 + $0x18] sm:$0xff]  ;;  %1885 = vmatprep.mubr.msk.f32.mxu0 %vm2484_vm0, %v3515_v7  ;;  %v382_v9 = vld [vmem:[%s2711_s6 + $0x20] sm:$0xff]  ;;  %v383_v10 = vld [vmem:[%s2711_s6 + $0x28] sm:$0xff]  ;;  %p1764_p1 = scmp.ne.s32.totalorder %s2466_s21, 1 }
  0x81   : > { %2091 = vmatprep.subr.bf16.mxu1 %v2483_v4  ;;  %1992 = vmatprep.mubr.msk.f32.mxu1 %vm2484_vm0, %v3515_v7  ;;  %v2071_v8 = vpack.c.bf16 %v381_v6, %v380_v3  ;;  %v2074_v11 = vpack.c.bf16 %v383_v10, %v382_v9  ;;  %v384_v12 = vld [vmem:[%s2711_s6 + $0x30] sm:$0xff]  ;;  %v385_v13 = vld [vmem:[%s2711_s6 + $0x38] sm:$0xff]  ;;  %v386_v15 = vld [vmem:[%s2711_s6 + $0x40] sm:$0xff] }
  0x82   : > { %2069 = vmatpush3.bf16.msra.mxu0 %v2068_v5  ;;  %v2077_v14 = vpack.c.bf16 %v385_v13, %v384_v12  ;;  %v387_v16 = vld [vmem:[%s2711_s6 + $0x48] sm:$0xff]  ;;  %v388_v18 = vld [vmem:[%s2711_s6 + $0x50] sm:$0xff]  ;;  %v389_v19 = vld [vmem:[%s2711_s6 + $0x58] sm:$0xff] }
  0x83   : > { %2070 = vmatprep.subr.bf16.mxu0 %v2483_v4  ;;  %v2080_v17 = vpack.c.bf16 %v387_v16, %v386_v15  ;;  %v2083_v20 = vpack.c.bf16 %v389_v19, %v388_v18  ;;  %v390_v21 = vld [vmem:[%s2711_s6 + $0x60] sm:$0xff]  ;;  %v391_v22 = vld [vmem:[%s2711_s6 + $0x68] sm:$0xff]  ;;  %v392_v24 = vld [vmem:[%s2711_s6 + $0x70] sm:$0xff] }
  0x84   : > { %v2086_v23 = vpack.c.bf16 %v391_v22, %v390_v21  ;;  %v393_v25 = vld [vmem:[%s2711_s6 + $0x78] sm:$0xff]  ;;  %v354_v28 = vld [vmem:[#allocation3 + $0x8] sm:$0xff]  ;;  %v355_v29 = vld [vmem:[#allocation3 + $0x10] sm:$0xff] }
  0x85   : > { %v2089_v26 = vpack.c.bf16 %v393_v25, %v392_v24  ;;  %v353_v27 = vld [vmem:[#allocation3] sm:$0xff]  ;;  %v356_v30 = vld [vmem:[#allocation3 + $0x18] sm:$0xff]  ;;  %v358_v32 = vld [vmem:[#allocation3 + $0x28] sm:$0xff] }
  0x86   : > { %2072 = vmatpush3.bf16.msra.mxu0 %v2071_v8  ;;  %v357_v31 = vld [vmem:[#allocation3 + $0x20] sm:$0xff]  ;;  %v359_v33 = vld [vmem:[#allocation3 + $0x30] sm:$0xff]  ;;  %v360_v34 = vld [vmem:[#allocation3 + $0x38] sm:$0xff] }
  0x87   : > { %2073 = vmatprep.subr.bf16.mxu0 %v2483_v4  ;;  %v361_v35 = vld [vmem:[#allocation3 + $0x40] sm:$0xff]  ;;  %v362_v36 = vld [vmem:[#allocation3 + $0x48] sm:$0xff]  ;;  %v363_v37 = vld [vmem:[#allocation3 + $0x50] sm:$0xff] }
  0x88   : > { %v364_v38 = vld [vmem:[#allocation3 + $0x58] sm:$0xff]  ;;  %v365_v39 = vld [vmem:[#allocation3 + $0x60] sm:$0xff]  ;;  %v366_v40 = vld [vmem:[#allocation3 + $0x68] sm:$0xff] }
  0x89   : > { %v367_v41 = vld [vmem:[#allocation3 + $0x70] sm:$0xff]  ;;  %v368_v42 = vld [vmem:[#allocation3 + $0x78] sm:$0xff]  ;;  %v369_v43 = vld [vmem:[#allocation3 + $0x80] sm:$0xff] }
  0x8a   : > { %2075 = vmatpush3.bf16.msra.mxu0 %v2074_v11  ;;  %v370_v44 = vld [vmem:[#allocation3 + $0x88] sm:$0xff]  ;;  %v371_v45 = vld [vmem:[#allocation3 + $0x90] sm:$0xff]  ;;  %v372_v46 = vld [vmem:[#allocation3 + $0x98] sm:$0xff] }
  0x8b   : > { %2076 = vmatprep.subr.bf16.mxu0 %v2483_v4  ;;  %v373_v47 = vld [vmem:[#allocation3 + $0xa0] sm:$0xff]  ;;  %v374_v48 = vld [vmem:[#allocation3 + $0xa8] sm:$0xff]  ;;  %v375_v49 = vld [vmem:[#allocation3 + $0xb0] sm:$0xff] }
  0x8c   : > { %v376_v50 = vld [vmem:[#allocation3 + $0xb8] sm:$0xff]  ;;  %v377_v51 = vld [vmem:[#allocation3 + $0xc0] sm:$0xff]  ;;  %v1291_v52 = vld [vmem:[%s2725_s10] sm:$0xff] }
  0x8d   : > { %v1292_v53 = vld [vmem:[%s2725_s10 + $0x8] sm:$0xff]  ;;  %v1293_v55 = vld [vmem:[%s2725_s10 + $0x10] sm:$0xff]  ;;  %v1294_v56 = vld [vmem:[%s2725_s10 + $0x18] sm:$0xff] }
  0x8e   : > { %2078 = vmatpush3.bf16.msra.mxu0 %v2077_v14  ;;  %v2092_v54 = vpack.c.bf16 %v1292_v53, %v1291_v52  ;;  %v2095_v57 = vpack.c.bf16 %v1294_v56, %v1293_v55  ;;  %v1295_v58 = vld [vmem:[%s2725_s10 + $0x20] sm:$0xff]  ;;  %v1296_v59 = vld [vmem:[%s2725_s10 + $0x28] sm:$0xff]  ;;  %v1297_v61 = vld [vmem:[%s2725_s10 + $0x30] sm:$0xff] }
  0x8f   : > { %2079 = vmatprep.subr.bf16.mxu0 %v2483_v4  ;;  %v2098_v60 = vpack.c.bf16 %v1296_v59, %v1295_v58  ;;  %v1298_v62 = vld [vmem:[%s2725_s10 + $0x38] sm:$0xff]  ;;  %v1299_v0 = vld [vmem:[%s2725_s10 + $0x40] sm:$0xff]  ;;  %v1300_v1 = vld [vmem:[%s2725_s10 + $0x48] sm:$0xff] }
  0x90   : > { %2093 = vmatpush3.bf16.msra.mxu1 %v2092_v54  ;;  %v2101_v63 = vpack.c.bf16 %v1298_v62, %v1297_v61  ;;  %v2104_v2 = vpack.c.bf16 %v1300_v1, %v1299_v0  ;;  %v1301_v3 = vld [vmem:[%s2725_s10 + $0x50] sm:$0xff]  ;;  %v1302_v5 = vld [vmem:[%s2725_s10 + $0x58] sm:$0xff]  ;;  %v1303_v8 = vld [vmem:[%s2725_s10 + $0x60] sm:$0xff] }
  0x91   : > { %2094 = vmatprep.subr.bf16.mxu1 %v2483_v4  ;;  %v2107_v6 = vpack.c.bf16 %v1302_v5, %v1301_v3  ;;  %v1304_v9 = vld [vmem:[%s2725_s10 + $0x68] sm:$0xff]  ;;  %v1305_v11 = vld [vmem:[%s2725_s10 + $0x70] sm:$0xff]  ;;  %v1306_v12 = vld [vmem:[%s2725_s10 + $0x78] sm:$0xff] }
  0x92   : > { %2081 = vmatpush3.bf16.msra.mxu0 %v2080_v17  ;;  %v2110_v10 = vpack.c.bf16 %v1304_v9, %v1303_v8  ;;  %v2113_v13 = vpack.c.bf16 %v1306_v12, %v1305_v11  ;;  %v2833_v14 = vld [vmem:[%s321_s12] ss:$0 sm:$0xff] }
  0x93   : > { %2082 = vmatprep.subr.bf16.mxu0 %v2483_v4 }
  0x94   : > { %2096 = vmatpush3.bf16.msra.mxu1 %v2095_v57 }
  0x95   : > { %2097 = vmatprep.subr.bf16.mxu1 %v2483_v4 }
  0x96   : > { %2084 = vmatpush3.bf16.msra.mxu0 %v2083_v20 }
  0x97   : > { %2085 = vmatprep.subr.bf16.mxu0 %v2483_v4 }
  0x98   : > { %2099 = vmatpush3.bf16.msra.mxu1 %v2098_v60 }
  0x99   : > { %2100 = vmatprep.subr.bf16.mxu1 %v2483_v4 }
  0x9a   : > { %2087 = vmatpush3.bf16.msra.mxu0 %v2086_v23 }
  0x9b   : > { %2088 = vmatprep.subr.bf16.mxu0 %v2483_v4 }
  0x9c   : > { %2102 = vmatpush3.bf16.msra.mxu1 %v2101_v63 }
  0x9d   : > { %2103 = vmatprep.subr.bf16.mxu1 %v2483_v4 }
  0x9e   : > { %2090 = vmatpush3.bf16.msra.mxu0 %v2089_v26 }
  0xa0   : > { %2105 = vmatpush3.bf16.msra.mxu1 %v2104_v2 }
  0xa1   : > { %1886 = vmatmul.mubr.f32.vlgmr.msra.gmra.mrb[0].mxu0 %v353_v27  ;;  %2106 = vmatprep.subr.bf16.mxu1 %v2483_v4 }
  0xa2   : > { %1888 = vmatprep.mubr.msk.f32.mxu0 %vm2484_vm0, %v3515_v7 }
  0xa4   : > { %2108 = vmatpush3.bf16.msra.mxu1 %v2107_v6 }
  0xa5   : > { %1889 = vmatmul.mubr.f32.gmra.mrb[2].mxu0 %v354_v28  ;;  %2109 = vmatprep.subr.bf16.mxu1 %v2483_v4 }
  0xa6   : > { %1891 = vmatprep.mubr.msk.f32.mxu0 %vm2484_vm0, %v3515_v7 }
  0xa8   : > { %2111 = vmatpush3.bf16.msra.mxu1 %v2110_v10 }
  0xa9   : > { %1892 = vmatmul.mubr.f32.gmra.mrb[4].mxu0 %v355_v29  ;;  %2112 = vmatprep.subr.bf16.mxu1 %v2483_v4 }
  0xaa   : > { %1894 = vmatprep.mubr.msk.f32.mxu0 %vm2484_vm0, %v3515_v7 }
  0xac   : > { %2114 = vmatpush3.bf16.msra.mxu1 %v2113_v13 }
  0xad   : > { %1895 = vmatmul.mubr.f32.gmra.mrb[6].mxu0 %v356_v30 }
  0xae   : > { %1897 = vmatprep.mubr.msk.f32.mxu0 %vm2484_vm0, %v3515_v7 }
  0xb1   : > { %1898 = vmatmul.mubr.f32.gmra.mrb[8].mxu0 %v357_v31 }
  0xb2   : > { %1900 = vmatprep.mubr.msk.f32.mxu0 %vm2484_vm0, %v3515_v7 }
  0xb5   : > { %1901 = vmatmul.mubr.f32.gmra.mrb[10].mxu0 %v358_v32 }
  0xb6   : > { %1903 = vmatprep.mubr.msk.f32.mxu0 %vm2484_vm0, %v3515_v7 }
  0xb9   : > { %1904 = vmatmul.mubr.f32.gmra.mrb[12].mxu0 %v359_v33 }
  0xba   : > { %1906 = vmatprep.mubr.msk.f32.mxu0 %vm2484_vm0, %v3515_v7 }
  0xbd   : > { %1907 = vmatmul.mubr.f32.gmra.mrb[14].mxu0 %v360_v34 }
  0xbe   : > { %1909 = vmatprep.mubr.msk.f32.mxu0 %vm2484_vm0, %v3515_v7 }
  0xc1   : > { %1910 = vmatmul.mubr.f32.gmra.mrb[16].mxu0 %v361_v35 }
  0xc2   : > { %1912 = vmatprep.mubr.msk.f32.mxu0 %vm2484_vm0, %v3515_v7 }
  0xc5   : > { %1913 = vmatmul.mubr.f32.gmra.mrb[18].mxu0 %v362_v36 }
  0xc6   : > { %1915 = vmatprep.mubr.msk.f32.mxu0 %vm2484_vm0, %v3515_v7 }
  0xc9   : > { %1916 = vmatmul.mubr.f32.gmra.mrb[20].mxu0 %v363_v37 }
  0xca   : > { %1918 = vmatprep.mubr.msk.f32.mxu0 %vm2484_vm0, %v3515_v7 }
  0xcd   : > { %1919 = vmatmul.mubr.f32.gmra.mrb[22].mxu0 %v364_v38 }
  0xce   : > { %1921 = vmatprep.mubr.msk.f32.mxu0 %vm2484_vm0, %v3515_v7 }
  0xd1   : > { %1922 = vmatmul.mubr.f32.gmra.mrb[24].mxu0 %v365_v39 }
  0xd2   : > { %1924 = vmatprep.mubr.msk.f32.mxu0 %vm2484_vm0, %v3515_v7 }
  0xd5   : > { %1925 = vmatmul.mubr.f32.gmra.mrb[26].mxu0 %v366_v40 }
  0xd6   : > { %1927 = vmatprep.mubr.msk.f32.mxu0 %vm2484_vm0, %v3515_v7 }
  0xd9   : > { %1928 = vmatmul.mubr.f32.gmra.mrb[28].mxu0 %v367_v41 }
  0xda   : > { %1930 = vmatprep.mubr.msk.f32.mxu0 %vm2484_vm0, %v3515_v7 }
  0xdd   : > { %1931 = vmatmul.mubr.f32.gmra.mrb[30].mxu0 %v368_v42 }
  0xde   : > { %1933 = vmatprep.mubr.msk.f32.mxu0 %vm2484_vm0, %v3515_v7 }
  0xe1   : > { %1934 = vmatmul.mubr.f32.gmra.mrb[32].mxu0 %v369_v43 }
  0xe2   : > { %1936 = vmatprep.mubr.msk.f32.mxu0 %vm2484_vm0, %v3515_v7 }
  0xe5   : > { %1937 = vmatmul.mubr.f32.gmra.mrb[34].mxu0 %v370_v44 }
  0xe6   : > { %1939 = vmatprep.mubr.msk.f32.mxu0 %vm2484_vm0, %v3515_v7 }
  0xe9   : > { %1940 = vmatmul.mubr.f32.gmra.mrb[36].mxu0 %v371_v45 }
  0xea   : > { %1942 = vmatprep.mubr.msk.f32.mxu0 %vm2484_vm0, %v3515_v7 }
  0xed   : > { %1943 = vmatmul.mubr.f32.gmra.mrb[38].mxu0 %v372_v46 }
  0xee   : > { %1945 = vmatprep.mubr.msk.f32.mxu0 %vm2484_vm0, %v3515_v7 }
  0xf1   : > { %1946 = vmatmul.mubr.f32.gmra.mrb[40].mxu0 %v373_v47 }
  0xf2   : > { %1948 = vmatprep.mubr.msk.f32.mxu0 %vm2484_vm0, %v3515_v7 }
  0xf5   : > { %1949 = vmatmul.mubr.f32.gmra.mrb[42].mxu0 %v374_v48 }
  0xf6   : > { %1951 = vmatprep.mubr.msk.f32.mxu0 %vm2484_vm0, %v3515_v7 }
  0xf9   : > { %1952 = vmatmul.mubr.f32.gmra.mrb[44].mxu0 %v375_v49 }
  0xfa   : > { %1954 = vmatprep.mubr.msk.f32.mxu0 %vm2484_vm0, %v3515_v7 }
  0xfd   : > { %1955 = vmatmul.mubr.f32.gmra.mrb[46].mxu0 %v376_v50 }
  0xfe   : > { %1957 = vmatprep.mubr.msk.f32.mxu0 %vm2484_vm0, %v3515_v7 }
 0x101   : > { %1958 = vmatmul.mubr.f32.gmra.mrb[48].mxu0 %v377_v51 }
 0x174   : > { %v467_v15 = vpop.f32.mrb[0].mxu0 }
 0x175   : > { %v468_v16 = vadd.f32 %v2833_v14, %v467_v15  ;;  %v1887_v17 = vpop.f32.mrb[1].mxu0 }
 0x177   : > { %v2836_v18 = vmul.f32 0.70710677, %v468_v16  ;;  %v2871_v0 = vmul.f32 0.5, %v468_v16 }
 0x178   : > { %v472_v19 = vpop.f32.mrb[2].mxu0 }
 0x179   : > { %v641_v20 = vand.u32 2147483647, %v2836_v18  ;;  %v473_v4 = vadd.f32 %v2833_v14, %v472_v19  ;;  %v1890_v21 = vpop.f32.mrb[3].mxu0  ;;  %vm1141_vm1 = vcmp.ge.f32.partialorder %v2836_v18, 0.0 }
 0x17b   : > { %v666_v22 = vmul.f32 0.3275911, %v641_v20  ;;  %v2840_v23 = vmul.f32 0.70710677, %v473_v4  ;;  %v991_v34 = vsub.f32 0.0, %v641_v20  ;;  %v2876_v5 = vmul.f32 0.5, %v473_v4 }
 0x17c   : > { %v477_v24 = vpop.f32.mrb[4].mxu0 }
 0x17d   : > { %v691_v25 = vadd.f32 1.0, %v666_v22  ;;  %v642_v26 = vand.u32 2147483647, %v2840_v23  ;;  %v1893_v27 = vpop.f32.mrb[5].mxu0  ;;  %v478_v32 = vadd.f32 %v2833_v14, %v477_v24  ;;  %v1016_v41 = vmul.f32 %v991_v34, %v641_v20 }
 0x17e   : > { %vm1142_vm2 = vcmp.ge.f32.partialorder %v2840_v23, 0.0 }
 0x17f   : > { %2202 = vrcp.f32 %v691_v25  ;;  %v667_v28 = vmul.f32 0.3275911, %v642_v26  ;;  %v2845_v37 = vmul.f32 0.70710677, %v478_v32  ;;  %v992_v46 = vsub.f32 0.0, %v642_v26 }
 0x180   : > { %v482_v29 = vpop.f32.mrb[6].mxu0  ;;  %v1041_v51 = vmul.f32 1.442695, %v1016_v41  ;;  %v2879_v11 = vmul.f32 0.5, %v478_v32 }
 0x181   : > { %v692_v30 = vadd.f32 1.0, %v667_v28  ;;  %v1896_v31 = vpop.f32.mrb[7].mxu0  ;;  %v483_v35 = vadd.f32 %v2833_v14, %v482_v29  ;;  %v643_v44 = vand.u32 2147483647, %v2845_v37  ;;  %v1017_v58 = vmul.f32 %v992_v46, %v642_v26 }
 0x182   : > { %vm1143_vm3 = vcmp.ge.f32.partialorder %v2845_v37, 0.0 }
 0x183   : > { %2204 = vrcp.f32 %v692_v30  ;;  %v2852_v42 = vmul.f32 0.70710677, %v483_v35  ;;  %v993_v55 = vsub.f32 0.0, %v643_v44  ;;  %v668_v60 = vmul.f32 0.3275911, %v643_v44 }
 0x184   : > { %v487_v33 = vpop.f32.mrb[8].mxu0  ;;  %2206 = vpow2.f32 %v1041_v51  ;;  %v1043_v10 = vmul.f32 1.442695, %v1017_v58  ;;  %v2885_v21 = vmul.f32 0.5, %v483_v35 }
 0x185   : > { %v1899_v36 = vpop.f32.mrb[9].mxu0  ;;  %v2848_v38 = vadd.f32 %v2833_v14, %v487_v33  ;;  %v644_v52 = vand.u32 2147483647, %v2852_v42  ;;  %v1018_v6 = vmul.f32 %v993_v55, %v643_v44  ;;  %v693_v15 = vadd.f32 1.0, %v668_v60 }
 0x186   : > { %2208 = vpow2.f32 %v1043_v10  ;;  %vm1144_vm4 = vcmp.ge.f32.partialorder %v2852_v42, 0.0 }
 0x187   : > { %v2857_v47 = vmul.f32 0.70710677, %v2848_v38  ;;  %v994_v1 = vsub.f32 0.0, %v644_v52  ;;  %v669_v12 = vmul.f32 0.3275911, %v644_v52  ;;  %2210 = vrcp.f32 %v693_v15 }
 0x188   : > { %v492_v39 = vpop.f32.mrb[10].mxu0  ;;  %v1045_v26 = vmul.f32 1.442695, %v1018_v6 }
 0x189   : > { %v2850_v40 = vpop.eup %2202  ;;  %v1902_v43 = vpop.f32.mrb[11].mxu0  ;;  %v2863_v53 = vadd.f32 %v2833_v14, %v492_v39  ;;  %v645_v59 = vand.u32 2147483647, %v2857_v47  ;;  %v1019_v4 = vmul.f32 %v994_v1, %v644_v52  ;;  %v694_v30 = vadd.f32 1.0, %v669_v12 }
 0x18a   : > { %v766_v45 = vmul.f32 1.0614054, %v2850_v40  ;;  %2212 = vpow2.f32 %v1045_v26  ;;  %v2903_v52 = vmul.f32 0.5, %v2848_v38  ;;  %vm1145_vm5 = vcmp.ge.f32.partialorder %v2857_v47, 0.0 }
 0x18b   : > { %v2874_v2 = vmul.f32 0.70710677, %v2863_v53  ;;  %v995_v13 = vsub.f32 0.0, %v645_v59  ;;  %v670_v27 = vmul.f32 0.3275911, %v645_v59  ;;  %2214 = vrcp.f32 %v694_v30 }
 0x18c   : > { %v497_v48 = vpop.f32.mrb[12].mxu0  ;;  %v791_v49 = vadd.f32 -1.4531521, %v766_v45  ;;  %v1047_v39 = vmul.f32 1.442695, %v1019_v4  ;;  %v2914_v38 = vmul.f32 0.5, %v2863_v53 }
 0x18d   : > { %v2859_v50 = vpop.eup %2204  ;;  %v1905_v54 = vpop.f32.mrb[13].mxu0  ;;  %v2869_v61 = vadd.f32 %v2833_v14, %v497_v48  ;;  %v646_v22 = vand.u32 2147483647, %v2874_v2  ;;  %v1020_v31 = vmul.f32 %v995_v13, %v645_v59  ;;  %v695_v46 = vadd.f32 1.0, %v670_v27 }
 0x18e   : > { %v816_v56 = vmul.f32 %v2850_v40, %v791_v49  ;;  %v767_v57 = vmul.f32 1.0614054, %v2859_v50  ;;  %v2207_v51 = vpop.eup %2206  ;;  %2216 = vpow2.f32 %v1047_v39  ;;  %vm1146_vm6 = vcmp.ge.f32.partialorder %v2874_v2, 0.0 }
 0x18f   : > { %v2882_v16 = vmul.f32 0.70710677, %v2869_v61  ;;  %v996_v41 = vsub.f32 0.0, %v646_v22  ;;  %v1049_v54 = vmul.f32 1.442695, %v1020_v31  ;;  %2218 = vrcp.f32 %v695_v46 }
 0x190   : > { %v502_v62 = vpop.f32.mrb[14].mxu0  ;;  %v841_v63 = vadd.f32 1.4214138, %v816_v56  ;;  %v792_v9 = vadd.f32 -1.4531521, %v767_v57 }
 0x191   : > { %v1908_v3 = vpop.f32.mrb[15].mxu0  ;;  %v503_v24 = vadd.f32 %v2833_v14, %v502_v62  ;;  %v647_v33 = vand.u32 2147483647, %v2882_v16  ;;  %v671_v56 = vmul.f32 0.3275911, %v646_v22  ;;  %v1021_v62 = vmul.f32 %v996_v41, %v646_v22 }
 0x192   : > { %v866_v8 = vmul.f32 %v2850_v40, %v841_v63  ;;  %v817_v20 = vmul.f32 %v2859_v50, %v792_v9  ;;  %2220 = vpow2.f32 %v1049_v54  ;;  %vm1147_vm7 = vcmp.ge.f32.partialorder %v2882_v16, 0.0 }
 0x193   : > { %v2896_v43 = vmul.f32 0.70710677, %v503_v24  ;;  %v997_v57 = vsub.f32 0.0, %v647_v33  ;;  %v672_v9 = vmul.f32 0.3275911, %v647_v33  ;;  %v696_v13 = vadd.f32 1.0, %v671_v56 }
 0x194   : > { %v507_v17 = vpop.f32.mrb[16].mxu0  ;;  %v891_v19 = vadd.f32 -0.28449672, %v866_v8  ;;  %v842_v29 = vadd.f32 1.4214138, %v817_v20  ;;  %v2918_v8 = vmul.f32 0.5, %v2869_v61  ;;  %v2209_v20 = vpop.eup %2208 }
 0x195   : > { %v1911_v25 = vpop.f32.mrb[17].mxu0  ;;  %v2891_v32 = vadd.f32 %v2833_v14, %v507_v17  ;;  %v1022_v15 = vmul.f32 %v997_v57, %v647_v33  ;;  %v1051_v4 = vmul.f32 1.442695, %v1021_v62  ;;  %v2926_v26 = vpop.eup %2210  ;;  %v2928_v27 = vmul.f32 0.5, %v503_v24 }
 0x196   : > { %v916_v28 = vmul.f32 %v2850_v40, %v891_v19  ;;  %v867_v36 = vmul.f32 %v2859_v50, %v842_v29  ;;  %v697_v31 = vadd.f32 1.0, %v672_v9  ;;  %2222 = vrcp.f32 %v696_v13 }
 0x197   : > { %v2906_v55 = vmul.f32 0.70710677, %v2891_v32  ;;  %2224 = vpow2.f32 %v1051_v4  ;;  %v2969_v23 = vmul.f32 0.5, %v2891_v32  ;;  %vm1148_vm8 = vcmp.ge.f32.partialorder %v2896_v43, 0.0 }
 0x198   : > { %v512_v34 = vpop.f32.mrb[18].mxu0  ;;  %v941_v35 = vadd.f32 0.2548296, %v916_v28  ;;  %v892_v49 = vadd.f32 -0.28449672, %v867_v36  ;;  %2226 = vrcp.f32 %v697_v31 }
 0x199   : > { %v2899_v44 = vadd.f32 %v2833_v14, %v512_v34  ;;  %v1914_v45 = vpop.f32.mrb[19].mxu0  ;;  %v649_v10 = vand.u32 2147483647, %v2906_v55  ;;  %v1053_v36 = vmul.f32 1.442695, %v1022_v15  ;;  %vm1149_vm9 = vcmp.ge.f32.partialorder %v2906_v55, 0.0 }
 0x19a   : > { %v966_v48 = vmul.f32 %v2850_v40, %v941_v35  ;;  %v917_v60 = vmul.f32 %v2859_v50, %v892_v49  ;;  %v648_v40 = vand.u32 2147483647, %v2896_v43  ;;  %v2938_v35 = vpop.eup %2212 }
 0x19b   : > { %v2911_v63 = vmul.f32 0.70710677, %v2899_v44  ;;  %v999_v33 = vsub.f32 0.0, %v649_v10  ;;  %v2940_v45 = vpop.eup %2214  ;;  %2228 = vpow2.f32 %v1053_v36 }
 0x19c   : > { %v517_v58 = vpop.f32.mrb[20].mxu0  ;;  %v1091_v59 = vmul.f32 %v2207_v51, %v966_v48  ;;  %v942_v6 = vadd.f32 0.2548296, %v917_v60  ;;  %v998_v22 = vsub.f32 0.0, %v648_v40  ;;  %v674_v51 = vmul.f32 0.3275911, %v649_v10 }
 0x19d   : > { %v1917_v1 = vpop.f32.mrb[21].mxu0  ;;  %v2922_v12 = vadd.f32 %v2833_v14, %v517_v58  ;;  %v650_v25 = vand.u32 2147483647, %v2911_v63  ;;  %v2949_v58 = vpop.eup %2216  ;;  %v1024_v60 = vmul.f32 %v999_v33, %v649_v10  ;;  %vm1150_vm10 = vcmp.ge.f32.partialorder %v2911_v63, 0.0 }
 0x19e   : > { %v1116_v3 = vsub.f32 1.0, %v1091_v59  ;;  %v967_v53 = vmul.f32 %v2859_v50, %v942_v6  ;;  %v673_v50 = vmul.f32 0.3275911, %v648_v40  ;;  %v1023_v46 = vmul.f32 %v998_v22, %v648_v40  ;;  %v2952_v40 = vpop.eup %2218 }
 0x19f   : > { %v2936_v34 = vmul.f32 0.70710677, %v2922_v12  ;;  %v1000_v18 = vsub.f32 0.0, %v650_v25  ;;  %v675_v13 = vmul.f32 0.3275911, %v650_v25  ;;  %v2966_v22 = vpop.eup %2220 }
 0x1a0   : > { %v522_v17 = vpop.f32.mrb[22].mxu0  ;;  %v1166_v19 = vsub.f32 0.0, %v1116_v3  ;;  %v1092_v30 = vmul.f32 %v2209_v20, %v967_v53  ;;  %v698_v59 = vadd.f32 1.0, %v673_v50  ;;  %v1055_v9 = vmul.f32 1.442695, %v1023_v46  ;;  %v2977_v46 = vpop.eup %2222 }
 0x1a1   : > { %v1920_v61 = vpop.f32.mrb[23].mxu0  ;;  %v2931_v28 = vadd.f32 %v2833_v14, %v522_v17  ;;  %v651_v62 = vand.u32 2147483647, %v2936_v34  ;;  %v1025_v15 = vmul.f32 %v1000_v18, %v650_v25  ;;  %v700_v36 = vadd.f32 1.0, %v675_v13 }
 0x1a2   : > { %v1191_v29 = vsel %vm1141_vm1, %v1116_v3, %v1166_v19  ;;  %v1117_v41 = vsub.f32 1.0, %v1092_v30  ;;  %v699_v19 = vadd.f32 1.0, %v674_v51  ;;  %2230 = vrcp.f32 %v698_v59  ;;  %v2980_v51 = vpop.eup %2224 }
 0x1a3   : > { %v1216_v24 = vadd.f32 1.0, %v1191_v29  ;;  %v2946_v54 = vmul.f32 0.70710677, %v2931_v28  ;;  %v1057_v61 = vmul.f32 1.442695, %v1024_v60  ;;  %v1001_v29 = vsub.f32 0.0, %v651_v62 }
 0x1a4   : > { %v527_v39 = vpop.f32.mrb[24].mxu0  ;;  %v1167_v57 = vsub.f32 0.0, %v1117_v41  ;;  %2232 = vpow2.f32 %v1055_v9  ;;  %v2992_v9 = vpop.eup %2226  ;;  %vm1151_vm11 = vcmp.ge.f32.partialorder %v2936_v34, 0.0 }
 0x1a5   : > { %v2943_v48 = vadd.f32 %v2833_v14, %v527_v39  ;;  %v1923_v49 = vpop.f32.mrb[25].mxu0  ;;  %v1241_v56 = vmul.f32 %v1216_v24, %v2871_v0  ;;  %v768_v0 = vmul.f32 1.0614054, %v2926_v26  ;;  %v652_v53 = vand.u32 2147483647, %v2946_v54 }
 0x1a6   : > { %v1192_v6 = vsel %vm1142_vm2, %v1117_v41, %v1167_v57  ;;  %v1059_v39 = vmul.f32 1.442695, %v1025_v15  ;;  %v676_v24 = vmul.f32 0.3275911, %v651_v62  ;;  %2234 = vrcp.f32 %v699_v19  ;;  %v2997_v19 = vpop.eup %2228 }
 0x1a7   : > { %v2955_v1 = vmul.f32 0.70710677, %v2943_v48  ;;  %1993 = vmatmul.mubr.f32.vlgmr.msra.gmra.mrb[0].mxu1 %v1241_v56  ;;  %v1217_v20 = vadd.f32 1.0, %v1192_v6  ;;  %v793_v4 = vadd.f32 -1.4531521, %v768_v0  ;;  %v1002_v32 = vsub.f32 0.0, %v652_v53 }
 0x1a8   : > { %v532_v3 = vpop.f32.mrb[26].mxu0  ;;  %1995 = vmatprep.mubr.msk.f32.mxu1 %vm2484_vm0, %v3515_v7  ;;  %v769_v49 = vmul.f32 1.0614054, %v2940_v45  ;;  %2236 = vpow2.f32 %v1057_v61  ;;  %v1026_v59 = vmul.f32 %v1001_v29, %v651_v62  ;;  %v701_v13 = vadd.f32 1.0, %v676_v24 }
 0x1a9   : > { %v2961_v10 = vadd.f32 %v2833_v14, %v532_v3  ;;  %v1926_v17 = vpop.f32.mrb[27].mxu0  ;;  %v653_v30 = vand.u32 2147483647, %v2955_v1  ;;  %v1242_v31 = vmul.f32 %v1217_v20, %v2876_v5  ;;  %v818_v33 = vmul.f32 %v2926_v26, %v793_v4 }
 0x1aa   : > { %v2983_v5 = vmul.f32 0.5, %v2899_v44  ;;  %v794_v0 = vadd.f32 -1.4531521, %v769_v49  ;;  %2238 = vrcp.f32 %v700_v36  ;;  %v2995_v44 = vmul.f32 0.5, %v2922_v12 }
 0x1ab   : > { %v2972_v25 = vmul.f32 0.70710677, %v2961_v10  ;;  %1996 = vmatmul.mubr.f32.gmra.mrb[2].mxu1 %v1242_v31  ;;  %v843_v18 = vadd.f32 1.4214138, %v818_v33  ;;  %v1003_v60 = vsub.f32 0.0, %v653_v30  ;;  %2240 = vpow2.f32 %v1059_v39 }
 0x1ac   : > { %v537_v50 = vpop.f32.mrb[28].mxu0  ;;  %1998 = vmatprep.mubr.msk.f32.mxu1 %vm2484_vm0, %v3515_v7  ;;  %v677_v15 = vmul.f32 0.3275911, %v652_v53  ;;  %v1027_v20 = vmul.f32 %v1002_v32, %v652_v53  ;;  %v819_v62 = vmul.f32 %v2940_v45, %v794_v0  ;;  %v678_v61 = vmul.f32 0.3275911, %v653_v30 }
 0x1ad   : > { %3543 = vst [vmem:[#allocation13_spill] sm:$0xff] %v2972_v25  ;;  %v1929_v41 = vpop.f32.mrb[29].mxu0  ;;  %v654_v56 = vand.u32 2147483647, %v2972_v25  ;;  %v2987_v57 = vadd.f32 %v2833_v14, %v537_v50  ;;  %v868_v3 = vmul.f32 %v2926_v26, %v843_v18  ;;  %v1061_v12 = vmul.f32 1.442695, %v1026_v59  ;;  %v3007_v18 = vpop.eup %2230 }
 0x1ae   : > { %v1028_v33 = vmul.f32 %v1003_v60, %v653_v30  ;;  %v844_v24 = vadd.f32 1.4214138, %v819_v62  ;;  %2242 = vrcp.f32 %v701_v13  ;;  %v3010_v53 = vmul.f32 0.5, %v2931_v28  ;;  %v3016_v59 = vpop.eup %2232 }
 0x1af   : > { %v893_v4 = vadd.f32 -0.28449672, %v868_v3  ;;  %v1004_v29 = vsub.f32 0.0, %v654_v56  ;;  %v3001_v31 = vmul.f32 0.70710677, %v2987_v57  ;;  %v702_v39 = vadd.f32 1.0, %v677_v15 }
 0x1b0   : > { %v542_v6 = vpop.f32.mrb[30].mxu0  ;;  %3545 = vst [vmem:[#allocation15_spill] sm:$0xff] %v3010_v53  ;;  %v679_v32 = vmul.f32 0.3275911, %v654_v56  ;;  %v1063_v3 = vmul.f32 1.442695, %v1027_v20  ;;  %v869_v30 = vmul.f32 %v2940_v45, %v844_v24  ;;  %v3023_v15 = vpop.eup %2234  ;;  %2244 = vpow2.f32 %v1061_v12 }
 0x1b1   : > { %v1932_v17 = vpop.f32.mrb[31].mxu0  ;;  %3544 = vst [vmem:[#allocation14_spill] sm:$0xff] %v3001_v31  ;;  %v3004_v50 = vadd.f32 %v2833_v14, %v542_v6  ;;  %v918_v36 = vmul.f32 %v2926_v26, %v893_v4  ;;  %v3013_v0 = vmul.f32 0.5, %v2943_v48  ;;  %v703_v60 = vadd.f32 1.0, %v678_v61 }
 0x1b2   : > { %v1029_v17 = vmul.f32 %v1004_v29, %v654_v56  ;;  %v655_v13 = vand.u32 2147483647, %v3001_v31  ;;  %v1065_v20 = vmul.f32 1.442695, %v1028_v33  ;;  %v894_v4 = vadd.f32 -0.28449672, %v869_v30 }
 0x1b3   : > { %3546 = vst [vmem:[#allocation16_spill] sm:$0xff] %v3013_v0  ;;  %v943_v6 = vadd.f32 0.2548296, %v918_v36  ;;  %v3021_v28 = vmul.f32 0.70710677, %v3004_v50  ;;  %v3026_v36 = vpop.eup %2236  ;;  %2246 = vrcp.f32 %v702_v39  ;;  %v3029_v24 = vmul.f32 0.5, %v2961_v10 }
 0x1b4   : > { %v547_v41 = vpop.f32.mrb[32].mxu0  ;;  %v704_v56 = vadd.f32 1.0, %v679_v32  ;;  %2248 = vpow2.f32 %v1063_v3  ;;  %v919_v12 = vmul.f32 %v2940_v45, %v894_v4  ;;  %v770_v33 = vmul.f32 1.0614054, %v2952_v40 }
 0x1b5   : > { %v1935_v49 = vpop.f32.mrb[33].mxu0  ;;  %3547 = vst [vmem:[#allocation17_spill] sm:$0xff] %v3021_v28  ;;  %v968_v48 = vmul.f32 %v2926_v26, %v943_v6  ;;  %3548 = vst [vmem:[#allocation18_spill] sm:$0xff] %v3029_v24  ;;  %v548_v61 = vadd.f32 %v2833_v14, %v547_v41  ;;  %v3035_v26 = vpop.eup %2238  ;;  %2250 = vrcp.f32 %v703_v60  ;;  %v1067_v6 = vmul.f32 1.442695, %v1029_v17 }
 0x1b6   : > { %v1005_v30 = vsub.f32 0.0, %v655_v13  ;;  %v656_v39 = vand.u32 2147483647, %v3021_v28  ;;  %v3038_v10 = vpop.eup %2240  ;;  %2252 = vpow2.f32 %v1065_v20  ;;  %v944_v41 = vadd.f32 0.2548296, %v919_v12 }
 0x1b7   : > { %v1093_v49 = vmul.f32 %v2938_v35, %v968_v48  ;;  %2254 = vrcp.f32 %v704_v56  ;;  %v3042_v35 = vmul.f32 0.5, %v2987_v57  ;;  %v3044_v48 = vmul.f32 0.70710677, %v548_v61 }
 0x1b8   : > { %v552_v62 = vpop.f32.mrb[34].mxu0  ;;  %v771_v60 = vmul.f32 1.0614054, %v2977_v46  ;;  %v680_v4 = vmul.f32 0.3275911, %v655_v13  ;;  %v969_v24 = vmul.f32 %v2940_v45, %v944_v41  ;;  %v1030_v12 = vmul.f32 %v1005_v30, %v655_v13 }
 0x1b9   : > { %v1938_v29 = vpop.f32.mrb[35].mxu0  ;;  %v1118_v32 = vsub.f32 1.0, %v1093_v49  ;;  %3549 = vst [vmem:[#allocation19_spill] sm:$0xff] %v3042_v35  ;;  %3550 = vst [vmem:[#allocation20_spill] sm:$0xff] %v3044_v48  ;;  %v3049_v49 = vpop.eup %2242  ;;  %v3052_v56 = vadd.f32 %v2833_v14, %v552_v62  ;;  %v3057_v0 = vmul.f32 0.5, %v3004_v50  ;;  %2256 = vpow2.f32 %v1067_v6 }
 0x1ba   : > { %v795_v29 = vadd.f32 -1.4531521, %v770_v33  ;;  %v1006_v33 = vsub.f32 0.0, %v656_v39  ;;  %v796_v57 = vadd.f32 -1.4531521, %v771_v60  ;;  %v3061_v31 = vpop.eup %2244  ;;  %v705_v62 = vadd.f32 1.0, %v680_v4 }
 0x1bb   : > { %v1168_v7 = vsub.f32 0.0, %v1118_v32  ;;  %3551 = vst [vmem:[#allocation21_spill] sm:$0xff] %v3057_v0  ;;  %v657_v13 = vand.u32 2147483647, %v3044_v48  ;;  %v3069_v6 = vmul.f32 0.70710677, %v3052_v56 }
 0x1bc   : > { %v557_v3 = vpop.f32.mrb[36].mxu0  ;;  %v820_v20 = vmul.f32 %v2952_v40, %v795_v29  ;;  %v681_v29 = vmul.f32 0.3275911, %v656_v39  ;;  %v3556_v48 = vmov 0.0   ;;  %2258 = vrcp.f32 %v705_v62 }
 0x1bd   : > { %v1941_v17 = vpop.f32.mrb[37].mxu0  ;;  %v1193_v35 = vsel %vm1143_vm3, %v1118_v32, %v1168_v7  ;;  %v821_v7 = vmul.f32 %v2977_v46, %v796_v57  ;;  %v3065_v50 = vpop.eup %2246  ;;  %v1069_v32 = vmul.f32 1.442695, %v1030_v12  ;;  %3552 = vst [vmem:[#allocation22_spill] sm:$0xff] %v3069_v6  ;;  %v3074_v4 = vadd.f32 %v2833_v14, %v557_v3 }
 0x1be   : > { %v1094_v17 = vmul.f32 %v2949_v58, %v969_v24  ;;  %v845_v28 = vadd.f32 1.4214138, %v820_v20  ;;  %v1218_v41 = vadd.f32 1.0, %v1193_v35  ;;  %v1031_v24 = vmul.f32 %v1006_v33, %v656_v39  ;;  %v3071_v35 = vpop.eup %2248 }
 0x1bf   : > { %v846_v0 = vadd.f32 1.4214138, %v821_v7  ;;  %3553 = vst [vmem:[#allocation23_spill] sm:$0xff] %v3074_v4  ;;  %v706_v57 = vadd.f32 1.0, %v681_v29  ;;  %v3078_v12 = vmul.f32 0.5, %v548_v61  ;;  %v1007_v39 = vsub.f32 0.0, %v657_v13 }
 0x1c0   : > { %v562_v45 = vpop.f32.mrb[38].mxu0  ;;  %v1119_v60 = vsub.f32 1.0, %v1094_v17  ;;  %v870_v37 = vmul.f32 %v2952_v40, %v845_v28  ;;  %v1243_v58 = vmul.f32 %v1218_v41, %v2879_v11  ;;  %v3076_v17 = vpop.eup %2250  ;;  %v682_v11 = vmul.f32 0.3275911, %v657_v13 }
 0x1c1   : > { %v1944_v30 = vpop.f32.mrb[39].mxu0  ;;  %3554 = vst [vmem:[#allocation24_spill] sm:$0xff] %v3078_v12  ;;  %v3080_v41 = vpop.eup %2252  ;;  %v871_v7 = vmul.f32 %v2977_v46, %v846_v0  ;;  %v1071_v61 = vmul.f32 1.442695, %v1031_v24  ;;  %2260 = vpow2.f32 %v1069_v32  ;;  %v3102_v32 = vadd.f32 %v2833_v14, %v562_v45 }
 0x1c2   : > { %v1169_v20 = vsub.f32 0.0, %v1119_v60  ;;  %v895_v30 = vadd.f32 -0.28449672, %v870_v37  ;;  %1999 = vmatmul.mubr.f32.gmra.mrb[4].mxu1 %v1243_v58  ;;  %3555 = vst [vmem:[#allocation25_spill] sm:$0xff] %v3080_v41  ;;  %v772_v58 = vmul.f32 1.0614054, %v2992_v9  ;;  %v3089_v29 = vpop.eup %2254  ;;  %2262 = vrcp.f32 %v706_v57 }
 0x1c3   : > { %2001 = vmatprep.mubr.msk.f32.mxu1 %vm2484_vm0, %v3556_v48  ;;  %v896_v53 = vadd.f32 -0.28449672, %v871_v7  ;;  %v3093_v41 = vmul.f32 0.70710677, %v3074_v4  ;;  %v707_v0 = vadd.f32 1.0, %v682_v11  ;;  %3558 = vst [vmem:[#allocation27_spill] sm:$0xff] %v3102_v32  ;;  %2264 = vpow2.f32 %v1071_v61 }
 0x1c4   : > { %v567_v28 = vpop.f32.mrb[40].mxu0  ;;  %v1194_v37 = vsel %vm1144_vm4, %v1119_v60, %v1169_v20  ;;  %v920_v3 = vmul.f32 %v2952_v40, %v895_v30  ;;  %v1032_v60 = vmul.f32 %v1007_v39, %v657_v13  ;;  %v797_v20 = vadd.f32 -1.4531521, %v772_v58 }
 0x1c5   : > { %v1947_v33 = vpop.f32.mrb[41].mxu0  ;;  %v1219_v12 = vadd.f32 1.0, %v1194_v37  ;;  %3557 = vst [vmem:[#allocation26_spill] sm:$0xff] %v3093_v41  ;;  %v921_v24 = vmul.f32 %v2977_v46, %v896_v53  ;;  %v773_v13 = vmul.f32 1.0614054, %v3007_v18  ;;  %2266 = vrcp.f32 %v707_v0 }
 0x1c6   : > { %v658_v33 = vand.u32 2147483647, %v3069_v6  ;;  %v945_v25 = vadd.f32 0.2548296, %v920_v3  ;;  %v3104_v3 = vpop.eup %2256  ;;  %v659_v45 = vand.u32 2147483647, %v3093_v41 }
 0x1c7   : > { %v1244_v42 = vmul.f32 %v1219_v12, %v2885_v21  ;;  %v822_v21 = vmul.f32 %v2992_v9, %v797_v20  ;;  %v946_v53 = vadd.f32 0.2548296, %v921_v24  ;;  %v1073_v57 = vmul.f32 1.442695, %v1032_v60 }
 0x1c8   : > { %v3097_v30 = vpop.f32.mrb[42].mxu0  ;;  %v970_v62 = vmul.f32 %v2952_v40, %v945_v25  ;;  %v1008_v7 = vsub.f32 0.0, %v658_v33  ;;  %v3112_v25 = vmul.f32 0.5, %v3052_v56  ;;  %v798_v11 = vadd.f32 -1.4531521, %v773_v13 }
 0x1c9   : > { %v1950_v37 = vpop.f32.mrb[43].mxu0  ;;  %2002 = vmatmul.mubr.f32.gmra.mrb[6].mxu1 %v1244_v42  ;;  %v847_v12 = vadd.f32 1.4214138, %v822_v21  ;;  %v971_v58 = vmul.f32 %v2977_v46, %v946_v53  ;;  %v3118_v61 = vmul.f32 0.70710677, %v3102_v32  ;;  %v1009_v21 = vsub.f32 0.0, %v659_v45 }
 0x1ca   : > { %2004 = vmatprep.mubr.msk.f32.mxu1 %vm2484_vm0, %v3556_v48  ;;  %v1095_v40 = vmul.f32 %v2966_v22, %v970_v62  ;;  %3559 = vst [vmem:[#allocation28_spill] sm:$0xff] %v3112_v25  ;;  %v3121_v22 = vadd.f32 %v2833_v14, %v567_v28  ;;  %v683_v42 = vmul.f32 0.3275911, %v658_v33  ;;  %v1033_v20 = vmul.f32 %v1008_v7, %v658_v33 }
 0x1cb   : > { %3560 = vst [vmem:[#allocation29_spill] sm:$0xff] %v3118_v61  ;;  %v872_v62 = vmul.f32 %v2992_v9, %v847_v12  ;;  %v823_v0 = vmul.f32 %v3007_v18, %v798_v11  ;;  %v1096_v37 = vmul.f32 %v2980_v51, %v971_v58  ;;  %v774_v46 = vmul.f32 1.0614054, %v3023_v15 }
 0x1cc   : > { %v1120_v39 = vsub.f32 1.0, %v1095_v40  ;;  %3561 = vst [vmem:[#allocation30_spill] sm:$0xff] %v3121_v22  ;;  %v3123_v56 = vpop.f32.mrb[44].mxu0  ;;  %v3131_v40 = vpop.eup %2258  ;;  %2268 = vpow2.f32 %v1073_v57  ;;  %v684_v28 = vmul.f32 0.3275911, %v659_v45  ;;  %v708_v4 = vadd.f32 1.0, %v683_v42 }
 0x1cd   : > { %v1953_v60 = vpop.f32.mrb[45].mxu0  ;;  %v897_v53 = vadd.f32 -0.28449672, %v872_v62  ;;  %v848_v32 = vadd.f32 1.4214138, %v823_v0  ;;  %v3133_v33 = vpop.eup %2260  ;;  %v1121_v12 = vsub.f32 1.0, %v1096_v37  ;;  %v1034_v6 = vmul.f32 %v1009_v21, %v659_v45 }
 0x1ce   : > { %v1170_v24 = vsub.f32 0.0, %v1120_v39  ;;  %v660_v11 = vand.u32 2147483647, %v3118_v61  ;;  %v3139_v51 = vmul.f32 0.70710677, %v3121_v22  ;;  %v3143_v62 = vpop.eup %2262  ;;  %v709_v37 = vadd.f32 1.0, %v684_v28 }
 0x1cf   : > { %v922_v25 = vmul.f32 %v2992_v9, %v897_v53  ;;  %v873_v57 = vmul.f32 %v3007_v18, %v848_v32  ;;  %v1075_v0 = vmul.f32 1.442695, %v1033_v20  ;;  %v1171_v41 = vsub.f32 0.0, %v1121_v12 }
 0x1d0   : > { %v3129_v13 = vpop.f32.mrb[46].mxu0  ;;  %v1195_v7 = vsel %vm1145_vm5, %v1120_v39, %v1170_v24  ;;  %v799_v47 = vadd.f32 -1.4531521, %v774_v46  ;;  %v3145_v39 = vpop.eup %2264  ;;  %v1010_v42 = vsub.f32 0.0, %v660_v11  ;;  %v661_v20 = vand.u32 2147483647, %v3139_v51 }
 0x1d1   : > { %v1956_v58 = vpop.f32.mrb[47].mxu0  ;;  %v1220_v60 = vadd.f32 1.0, %v1195_v7  ;;  %v947_v22 = vadd.f32 0.2548296, %v922_v25  ;;  %v898_v61 = vadd.f32 -0.28449672, %v873_v57  ;;  %v1196_v32 = vsel %vm1146_vm6, %v1121_v12, %v1171_v41  ;;  %v3155_v46 = vpop.eup %2266 }
 0x1d2   : > { %v824_v45 = vmul.f32 %v3023_v15, %v799_v47  ;;  %v3161_v53 = vadd.f32 %v2833_v14, %v3097_v30  ;;  %2270 = vrcp.f32 %v708_v4  ;;  %v1077_v2 = vmul.f32 1.442695, %v1034_v6 }
 0x1d3   : > { %v1245_v24 = vmul.f32 %v1220_v60, %v2903_v52  ;;  %v1221_v52 = vadd.f32 1.0, %v1196_v32  ;;  %v972_v25 = vmul.f32 %v2992_v9, %v947_v22  ;;  %v923_v28 = vmul.f32 %v3007_v18, %v898_v61 }
 0x1d4   : > { %v3148_v58 = vpop.f32.mrb[48].mxu0  ;;  %v849_v41 = vadd.f32 1.4214138, %v824_v45  ;;  %v775_v7 = vmul.f32 1.0614054, %v3035_v26  ;;  %v1035_v61 = vmul.f32 %v1010_v42, %v660_v11  ;;  %2272 = vpow2.f32 %v1075_v0 }
 0x1d5   : > { %v1959_v21 = vpop.f32.mrb[49].mxu0  ;;  %2005 = vmatmul.mubr.f32.gmra.mrb[8].mxu1 %v1245_v24  ;;  %v1246_v12 = vmul.f32 %v1221_v52, %v2914_v38  ;;  %v1097_v60 = vmul.f32 %v2997_v19, %v972_v25  ;;  %v685_v57 = vmul.f32 0.3275911, %v660_v11  ;;  %v948_v9 = vadd.f32 0.2548296, %v923_v28 }
 0x1d6   : > { %2007 = vmatprep.mubr.msk.f32.mxu1 %vm2484_vm0, %v3556_v48  ;;  %v874_v30 = vmul.f32 %v3023_v15, %v849_v41  ;;  %v3171_v4 = vmul.f32 0.70710677, %v3161_v53  ;;  %v800_v22 = vadd.f32 -1.4531521, %v775_v7  ;;  %v3173_v47 = vpop.eup %2268  ;;  %v1011_v38 = vsub.f32 0.0, %v661_v20 }
 0x1d7   : > { %v1122_v6 = vsub.f32 1.0, %v1097_v60  ;;  %v973_v24 = vmul.f32 %v3007_v18, %v948_v9  ;;  %v3178_v19 = vadd.f32 %v2833_v14, %v3123_v56  ;;  %v710_v21 = vadd.f32 1.0, %v685_v57 }
 0x1d8   : > { %v899_v11 = vadd.f32 -0.28449672, %v874_v30  ;;  %v662_v32 = vand.u32 2147483647, %v3171_v4  ;;  %v825_v42 = vmul.f32 %v3035_v26, %v800_v22  ;;  %2274 = vrcp.f32 %v709_v37 }
 0x1d9   : > { %2008 = vmatmul.mubr.f32.gmra.mrb[10].mxu1 %v1246_v12  ;;  %v1172_v45 = vsub.f32 0.0, %v1122_v6  ;;  %v1098_v52 = vmul.f32 %v3016_v59, %v973_v24  ;;  %v3186_v18 = vmul.f32 0.70710677, %v3178_v19  ;;  %v1079_v25 = vmul.f32 1.442695, %v1035_v61 }
 0x1da   : > { %2010 = vmatprep.mubr.msk.f32.mxu1 %vm2484_vm0, %v3556_v48  ;;  %v924_v56 = vmul.f32 %v3023_v15, %v899_v11  ;;  %v850_v0 = vadd.f32 1.4214138, %v825_v42  ;;  %2276 = vpow2.f32 %v1077_v2  ;;  %v1036_v7 = vmul.f32 %v1011_v38, %v661_v20 }
 0x1db   : > { %v1197_v28 = vsel %vm1147_vm7, %v1122_v6, %v1172_v45  ;;  %v1123_v41 = vsub.f32 1.0, %v1098_v52  ;;  %v1012_v9 = vsub.f32 0.0, %v662_v32  ;;  %v776_v57 = vmul.f32 1.0614054, %v3049_v49 }
 0x1dc   : > { %v1222_v12 = vadd.f32 1.0, %v1197_v28  ;;  %v949_v60 = vadd.f32 0.2548296, %v924_v56  ;;  %2278 = vrcp.f32 %v710_v21  ;;  %v875_v37 = vmul.f32 %v3035_v26, %v850_v0  ;;  %v3195_v30 = vpop.eup %2270 }
 0x1dd   : > { %v1173_v59 = vsub.f32 0.0, %v1123_v41  ;;  %v663_v61 = vand.u32 2147483647, %v3186_v18  ;;  %2280 = vpow2.f32 %v1079_v25  ;;  %v686_v2 = vmul.f32 0.3275911, %v661_v20 }
 0x1de   : > { %v1247_v16 = vmul.f32 %v1222_v12, %v2918_v8  ;;  %v974_v22 = vmul.f32 %v3023_v15, %v949_v60  ;;  %v1081_v24 = vmul.f32 1.442695, %v1036_v7  ;;  %v687_v38 = vmul.f32 0.3275911, %v662_v32  ;;  %v3209_v15 = vpop.eup %2272 }
 0x1df   : > { %v1198_v6 = vsel %vm1148_vm8, %v1123_v41, %v1173_v59  ;;  %v900_v11 = vadd.f32 -0.28449672, %v875_v37  ;;  %v1037_v21 = vmul.f32 %v1012_v9, %v662_v32  ;;  %v801_v52 = vadd.f32 -1.4531521, %v776_v57 }
 0x1e0   : > { %2011 = vmatmul.mubr.f32.gmra.mrb[12].mxu1 %v1247_v16  ;;  %v1223_v42 = vadd.f32 1.0, %v1198_v6  ;;  %v1099_v45 = vmul.f32 %v3026_v36, %v974_v22  ;;  %v688_v20 = vmul.f32 0.3275911, %v663_v61  ;;  %v1013_v25 = vsub.f32 0.0, %v663_v61 }
 0x1e1   : > { %2013 = vmatprep.mubr.msk.f32.mxu1 %vm2484_vm0, %v3556_v48  ;;  %v925_v8 = vmul.f32 %v3035_v26, %v900_v11  ;;  %v3207_v43 = vadd.f32 %v2833_v14, %v3129_v13  ;;  %v826_v36 = vmul.f32 %v3049_v49, %v801_v52  ;;  %v777_v32 = vmul.f32 1.0614054, %v3065_v50 }
 0x1e2   : > { %v1248_v56 = vmul.f32 %v1223_v42, %v2928_v27  ;;  %v1124_v0 = vsub.f32 1.0, %v1099_v45  ;;  %v711_v28 = vadd.f32 1.0, %v686_v2  ;;  %v712_v41 = vadd.f32 1.0, %v687_v38  ;;  %v3217_v60 = vpop.eup %2274 }
 0x1e3   : > { %v950_v7 = vadd.f32 0.2548296, %v925_v8  ;;  %v3215_v12 = vmul.f32 0.70710677, %v3207_v43  ;;  %v851_v9 = vadd.f32 1.4214138, %v826_v36  ;;  %v3222_v27 = vadd.f32 %v2833_v14, %v3148_v58 }
 0x1e4   : > { %2014 = vmatmul.mubr.f32.gmra.mrb[14].mxu1 %v1248_v56  ;;  %v1174_v13 = vsub.f32 0.0, %v1124_v0  ;;  %v802_v57 = vadd.f32 -1.4531521, %v777_v32  ;;  %v3224_v59 = vpop.eup %2276  ;;  %v1083_v37 = vmul.f32 1.442695, %v1037_v21  ;;  %v1038_v2 = vmul.f32 %v1013_v25, %v663_v61 }
 0x1e5   : > { %2016 = vmatprep.mubr.msk.f32.mxu1 %vm2484_vm0, %v3556_v48  ;;  %v975_v16 = vmul.f32 %v3035_v26, %v950_v7  ;;  %v664_v22 = vand.u32 2147483647, %v3215_v12  ;;  %v713_v38 = vadd.f32 1.0, %v688_v20  ;;  %v876_v11 = vmul.f32 %v3049_v49, %v851_v9 }
 0x1e6   : > { %v1199_v6 = vsel %vm1149_vm9, %v1124_v0, %v1174_v13  ;;  %v827_v14 = vmul.f32 %v3065_v50, %v802_v57  ;;  %v3234_v58 = vpop.eup %2278  ;;  %v778_v21 = vmul.f32 1.0614054, %v3076_v17  ;;  %2282 = vrcp.f32 %v711_v28 }
 0x1e7   : > { %v1224_v42 = vadd.f32 1.0, %v1199_v6  ;;  %v1100_v45 = vmul.f32 %v3038_v10, %v975_v16  ;;  %v689_v52 = vmul.f32 0.3275911, %v664_v22  ;;  %v3238_v26 = vpop.eup %2280  ;;  %v901_v61 = vadd.f32 -0.28449672, %v876_v11 }
 0x1e8   : > { %v852_v8 = vadd.f32 1.4214138, %v827_v14  ;;  %v3241_v55 = vmul.f32 0.70710677, %v3222_v27  ;;  %2284 = vpow2.f32 %v1081_v24  ;;  %v1085_v56 = vmul.f32 1.442695, %v1038_v2 }
 0x1e9   : > { %v1249_v20 = vmul.f32 %v1224_v42, %v2969_v23  ;;  %v1125_v25 = vsub.f32 1.0, %v1100_v45  ;;  %2286 = vrcp.f32 %v712_v41  ;;  %v926_v0 = vmul.f32 %v3049_v49, %v901_v61 }
 0x1ea   : > { %v877_v10 = vmul.f32 %v3065_v50, %v852_v8  ;;  %v665_v36 = vand.u32 2147483647, %v3241_v55  ;;  %2288 = vpow2.f32 %v1083_v37  ;;  %v1014_v28 = vsub.f32 0.0, %v664_v22 }
 0x1eb   : > { %2017 = vmatmul.mubr.f32.gmra.mrb[16].mxu1 %v1249_v20  ;;  %v1175_v32 = vsub.f32 0.0, %v1125_v25  ;;  %v803_v7 = vadd.f32 -1.4531521, %v778_v21  ;;  %2290 = vrcp.f32 %v713_v38  ;;  %v951_v24 = vadd.f32 0.2548296, %v926_v0 }
 0x1ec   : > { %2019 = vmatprep.mubr.msk.f32.mxu1 %vm2484_vm0, %v3556_v48  ;;  %v714_v23 = vadd.f32 1.0, %v689_v52  ;;  %v902_v13 = vadd.f32 -0.28449672, %v877_v10  ;;  %2292 = vpow2.f32 %v1085_v56  ;;  %v690_v9 = vmul.f32 0.3275911, %v665_v36 }
 0x1ed   : > { %v1200_v41 = vsel %vm1150_vm10, %v1125_v25, %v1175_v32  ;;  %v828_v57 = vmul.f32 %v3076_v17, %v803_v7  ;;  %v976_v16 = vmul.f32 %v3049_v49, %v951_v24  ;;  %v1015_v6 = vsub.f32 0.0, %v665_v36 }
 0x1ee   : > { %v1225_v37 = vadd.f32 1.0, %v1200_v41  ;;  %v927_v2 = vmul.f32 %v3065_v50, %v902_v13  ;;  %v3255_v11 = vmul.f32 %v1014_v28, %v664_v22  ;;  %v779_v14 = vmul.f32 1.0614054, %v3089_v29 }
 0x1ef   : > { %v853_v38 = vadd.f32 1.4214138, %v828_v57  ;;  %v780_v42 = vmul.f32 1.0614054, %v3131_v40  ;;  %v1101_v45 = vmul.f32 %v3061_v31, %v976_v16  ;;  %2294 = vrcp.f32 %v714_v23 }
 0x1f0   : > { %v1250_v63 = vmul.f32 %v1225_v37, %v2983_v5  ;;  %v952_v52 = vadd.f32 0.2548296, %v927_v2  ;;  %vm1152_vm12 = vcmp.ge.f32.partialorder %v2946_v54, 0.0  ;;  %v715_v21 = vadd.f32 1.0, %v690_v9  ;;  %v3263_v22 = vpop.eup %2282 }
 0x1f1   : > { %v878_v49 = vmul.f32 %v3076_v17, %v853_v38  ;;  %v804_v61 = vadd.f32 -1.4531521, %v779_v14  ;;  %v805_v8 = vadd.f32 -1.4531521, %v780_v42  ;;  %v1126_v20 = vsub.f32 1.0, %v1101_v45 }
 0x1f2   : > { %2020 = vmatmul.mubr.f32.gmra.mrb[18].mxu1 %v1250_v63  ;;  %v977_v25 = vmul.f32 %v3065_v50, %v952_v52  ;;  %v781_v56 = vmul.f32 1.0614054, %v3143_v62  ;;  %v782_v5 = vmul.f32 1.0614054, %v3155_v46  ;;  %v3268_v31 = vpop.eup %2284  ;;  %v3272_v0 = vmul.f32 %v1015_v6, %v665_v36 }
 0x1f3   : > { %2022 = vmatprep.mubr.msk.f32.mxu1 %vm2484_vm0, %v3556_v48  ;;  %v903_v10 = vadd.f32 -0.28449672, %v878_v49  ;;  %v829_v32 = vmul.f32 %v3089_v29, %v804_v61  ;;  %v830_v28 = vmul.f32 %v3131_v40, %v805_v8  ;;  %v3276_v7 = vpop.eup %2286  ;;  %v1176_v24 = vsub.f32 0.0, %v1126_v20 }
 0x1f4   : > { %v1102_v50 = vmul.f32 %v3071_v35, %v977_v25  ;;  %v806_v23 = vadd.f32 -1.4531521, %v781_v56  ;;  %v807_v13 = vadd.f32 -1.4531521, %v782_v5  ;;  %v3279_v41 = vpop.eup %2288  ;;  %v783_v36 = vmul.f32 1.0614054, %v3195_v30 }
 0x1f5   : > { %v928_v9 = vmul.f32 %v3076_v17, %v903_v10  ;;  %v854_v57 = vadd.f32 1.4214138, %v829_v32  ;;  %v855_v37 = vadd.f32 1.4214138, %v830_v28  ;;  %v3283_v16 = vpop.eup %2290  ;;  %v1201_v2 = vsel %vm1151_vm11, %v1126_v20, %v1176_v24 }
 0x1f6   : > { %v1127_v6 = vsub.f32 1.0, %v1102_v50  ;;  %v831_v38 = vmul.f32 %v3143_v62, %v806_v23  ;;  %v832_v35 = vmul.f32 %v3155_v46, %v807_v13  ;;  %v3289_v14 = vpop.eup %2292  ;;  %v1226_v42 = vadd.f32 1.0, %v1201_v2  ;;  %v3562_v50 = vld [vmem:[#allocation25_spill] sm:$0xff] }
 0x1f7   : > { %v953_v63 = vadd.f32 0.2548296, %v928_v9  ;;  %v879_v45 = vmul.f32 %v3089_v29, %v854_v57  ;;  %v880_v52 = vmul.f32 %v3131_v40, %v855_v37  ;;  %vm1153_vm13 = vcmp.ge.f32.partialorder %v2955_v1, 0.0  ;;  %v3563_v37 = vld [vmem:[#allocation15_spill] sm:$0xff]  ;;  %v3568_v1 = vld [vmem:[#allocation16_spill] sm:$0xff] }
 0x1f8   : > { %v1177_v49 = vsub.f32 0.0, %v1127_v6  ;;  %2296 = vrcp.f32 %v715_v21  ;;  %v856_v61 = vadd.f32 1.4214138, %v831_v38  ;;  %v857_v34 = vadd.f32 1.4214138, %v832_v35  ;;  %v3564_v35 = vld [vmem:[#allocation13_spill] sm:$0xff] }
 0x1f9   : > { %v1251_v8 = vmul.f32 %v1226_v42, %v2995_v44  ;;  %v978_v20 = vmul.f32 %v3076_v17, %v953_v63  ;;  %v904_v25 = vadd.f32 -0.28449672, %v879_v45  ;;  %v905_v56 = vadd.f32 -0.28449672, %v880_v52  ;;  %v3296_v5 = vpop.eup %2294  ;;  %v3565_v42 = vld [vmem:[#allocation14_spill] sm:$0xff] }
 0x1fa   : > { %v1202_v10 = vsel %vm1152_vm12, %v1127_v6, %v1177_v49  ;;  %v881_v32 = vmul.f32 %v3143_v62, %v856_v61  ;;  %v882_v28 = vmul.f32 %v3155_v46, %v857_v34  ;;  %v808_v24 = vadd.f32 -1.4531521, %v783_v36 }
 0x1fb   : > { %2023 = vmatmul.mubr.f32.gmra.mrb[20].mxu1 %v1251_v8  ;;  %v1227_v21 = vadd.f32 1.0, %v1202_v10  ;;  %v1103_v23 = vmul.f32 %v3562_v50, %v978_v20  ;;  %v929_v44 = vmul.f32 %v3089_v29, %v904_v25  ;;  %v930_v17 = vmul.f32 %v3131_v40, %v905_v56 }
 0x1fc   : > { %2025 = vmatprep.mubr.msk.f32.mxu1 %vm2484_vm0, %v3556_v48  ;;  %v906_v13 = vadd.f32 -0.28449672, %v881_v32  ;;  %v907_v9 = vadd.f32 -0.28449672, %v882_v28  ;;  %v833_v54 = vmul.f32 %v3195_v30, %v808_v24  ;;  %v784_v57 = vmul.f32 1.0614054, %v3217_v60 }
 0x1fd   : > { %v1252_v2 = vmul.f32 %v1227_v21, %v3563_v37  ;;  %v1128_v36 = vsub.f32 1.0, %v1103_v23  ;;  %v954_v6 = vadd.f32 0.2548296, %v929_v44  ;;  %v955_v38 = vadd.f32 0.2548296, %v930_v17  ;;  %v3566_v28 = vld [vmem:[#allocation17_spill] sm:$0xff] }
 0x1fe   : > { %vm1154_vm14 = vcmp.ge.f32.partialorder %v3564_v35, 0.0  ;;  %vm1155_vm15 = vcmp.ge.f32.partialorder %v3565_v42, 0.0  ;;  %v931_v63 = vmul.f32 %v3143_v62, %v906_v13  ;;  %v932_v45 = vmul.f32 %v3155_v46, %v907_v9  ;;  %v3567_v24 = vld [vmem:[#allocation20_spill] sm:$0xff] }
 0x1ff   : > { %v858_v52 = vadd.f32 1.4214138, %v833_v54  ;;  %v809_v49 = vadd.f32 -1.4531521, %v784_v57  ;;  %2026 = vmatmul.mubr.f32.gmra.mrb[22].mxu1 %v1252_v2  ;;  %v1178_v61 = vsub.f32 0.0, %v1128_v36  ;;  %v979_v34 = vmul.f32 %v3089_v29, %v954_v6 }
 0x200   : > { %v980_v8 = vmul.f32 %v3131_v40, %v955_v38  ;;  %v785_v20 = vmul.f32 1.0614054, %v3234_v58  ;;  %2028 = vmatprep.mubr.msk.f32.mxu1 %vm2484_vm0, %v3556_v48  ;;  %v956_v25 = vadd.f32 0.2548296, %v931_v63  ;;  %v957_v56 = vadd.f32 0.2548296, %v932_v45 }
 0x201   : > { %v883_v10 = vmul.f32 %v3195_v30, %v858_v52  ;;  %v834_v32 = vmul.f32 %v3217_v60, %v809_v49  ;;  %vm1156_vm1 = vcmp.ge.f32.partialorder %v3566_v28, 0.0  ;;  %vm1157_vm2 = vcmp.ge.f32.partialorder %v3567_v24, 0.0 }
 0x202   : > { %v1203_v29 = vsel %vm1153_vm13, %v1128_v36, %v1178_v61  ;;  %v1104_v40 = vmul.f32 %v3104_v3, %v979_v34  ;;  %v1105_v21 = vmul.f32 %v3133_v33, %v980_v8  ;;  %v810_v50 = vadd.f32 -1.4531521, %v785_v20  ;;  %v3327_v23 = vpop.eup %2296  ;;  %v3569_v20 = vld [vmem:[#allocation22_spill] sm:$0xff] }
 0x203   : > { %v1228_v44 = vadd.f32 1.0, %v1203_v29  ;;  %v981_v17 = vmul.f32 %v3143_v62, %v956_v25  ;;  %v982_v13 = vmul.f32 %v3155_v46, %v957_v56  ;;  %v908_v9 = vadd.f32 -0.28449672, %v883_v10 }
 0x204   : > { %v1129_v54 = vsub.f32 1.0, %v1104_v40  ;;  %v1130_v57 = vsub.f32 1.0, %v1105_v21  ;;  %v859_v37 = vadd.f32 1.4214138, %v834_v32  ;;  %v835_v2 = vmul.f32 %v3234_v58, %v810_v50 }
 0x205   : > { %v1253_v36 = vmul.f32 %v1228_v44, %v3568_v1  ;;  %v1106_v3 = vmul.f32 %v3145_v39, %v981_v17  ;;  %v1107_v33 = vmul.f32 %v3173_v47, %v982_v13  ;;  %v933_v6 = vmul.f32 %v3195_v30, %v908_v9  ;;  %v3570_v44 = vld [vmem:[#allocation18_spill] sm:$0xff]  ;;  %v3571_v9 = vld [vmem:[#allocation19_spill] sm:$0xff] }
 0x206   : > { %v1179_v38 = vsub.f32 0.0, %v1129_v54  ;;  %v1180_v63 = vsub.f32 0.0, %v1130_v57  ;;  %v884_v62 = vmul.f32 %v3217_v60, %v859_v37  ;;  %v860_v45 = vadd.f32 1.4214138, %v835_v2  ;;  %v3572_v2 = vld [vmem:[#allocation26_spill] sm:$0xff] }
 0x207   : > { %2029 = vmatmul.mubr.f32.gmra.mrb[24].mxu1 %v1253_v36  ;;  %v1131_v46 = vsub.f32 1.0, %v1106_v3  ;;  %v1132_v52 = vsub.f32 1.0, %v1107_v33  ;;  %v958_v49 = vadd.f32 0.2548296, %v933_v6  ;;  %v786_v61 = vmul.f32 1.0614054, %v3263_v22 }
 0x208   : > { %2031 = vmatprep.mubr.msk.f32.mxu1 %vm2484_vm0, %v3556_v48  ;;  %v1204_v39 = vsel %vm1154_vm14, %v1129_v54, %v1179_v38  ;;  %v1205_v47 = vsel %vm1155_vm15, %v1130_v57, %v1180_v63  ;;  %v909_v34 = vadd.f32 -0.28449672, %v884_v62  ;;  %v885_v8 = vmul.f32 %v3234_v58, %v860_v45  ;;  %v3573_v6 = vld [vmem:[#allocation21_spill] sm:$0xff] }
 0x209   : > { %vm1158_vm3 = vcmp.ge.f32.partialorder %v3569_v20, 0.0  ;;  %v1229_v25 = vadd.f32 1.0, %v1204_v39  ;;  %v1230_v56 = vadd.f32 1.0, %v1205_v47  ;;  %v1181_v10 = vsub.f32 0.0, %v1131_v46  ;;  %v3574_v39 = vld [vmem:[#allocation29_spill] sm:$0xff] }
 0x20a   : > { %v1182_v32 = vsub.f32 0.0, %v1132_v52  ;;  %v983_v29 = vmul.f32 %v3195_v30, %v958_v49  ;;  %v934_v40 = vmul.f32 %v3217_v60, %v909_v34  ;;  %v910_v21 = vadd.f32 -0.28449672, %v885_v8 }
 0x20b   : > { %v811_v50 = vadd.f32 -1.4531521, %v786_v61  ;;  %v1087_v35 = vmul.f32 1.442695, %v3255_v11  ;;  %v1254_v42 = vmul.f32 %v1229_v25, %v3570_v44  ;;  %v1206_v17 = vsel %vm1156_vm1, %v1131_v46, %v1181_v10  ;;  %v3575_v10 = vld [vmem:[#allocation24_spill] sm:$0xff] }
 0x20c   : > { %v1207_v13 = vsel %vm1157_vm2, %v1132_v52, %v1182_v32  ;;  %v1255_v54 = vmul.f32 %v1230_v56, %v3571_v9  ;;  %v1231_v57 = vadd.f32 1.0, %v1206_v17  ;;  %v1108_v37 = vmul.f32 %v3209_v15, %v983_v29 }
 0x20d   : > { %v959_v30 = vadd.f32 0.2548296, %v934_v40  ;;  %vm1159_vm4 = vcmp.ge.f32.partialorder %v3572_v2, 0.0  ;;  %2032 = vmatmul.mubr.f32.gmra.mrb[26].mxu1 %v1254_v42  ;;  %v935_v1 = vmul.f32 %v3234_v58, %v910_v21  ;;  %v836_v11 = vmul.f32 %v3263_v22, %v811_v50 }
 0x20e   : > { %v787_v36 = vmul.f32 1.0614054, %v3276_v7  ;;  %v788_v28 = vmul.f32 1.0614054, %v3283_v16  ;;  %v1089_v24 = vmul.f32 1.442695, %v3272_v0  ;;  %2034 = vmatprep.mubr.msk.f32.mxu1 %vm2484_vm0, %v3556_v48  ;;  %v1256_v38 = vmul.f32 %v1231_v57, %v3573_v6 }
 0x20f   : > { %v1232_v3 = vadd.f32 1.0, %v1207_v13  ;;  %v1133_v33 = vsub.f32 1.0, %v1108_v37  ;;  %v984_v15 = vmul.f32 %v3217_v60, %v959_v30  ;;  %v960_v63 = vadd.f32 0.2548296, %v935_v1 }
 0x210   : > { %v861_v62 = vadd.f32 1.4214138, %v836_v11  ;;  %v812_v45 = vadd.f32 -1.4531521, %v787_v36  ;;  %v813_v49 = vadd.f32 -1.4531521, %v788_v28  ;;  %2298 = vpow2.f32 %v1087_v35 }
 0x211   : > { %v1183_v46 = vsub.f32 0.0, %v1133_v33  ;;  %v1109_v52 = vmul.f32 %v3224_v59, %v984_v15  ;;  %v789_v61 = vmul.f32 1.0614054, %v3296_v5  ;;  %vm1160_vm5 = vcmp.ge.f32.partialorder %v3574_v39, 0.0  ;;  %2035 = vmatmul.mubr.f32.gmra.mrb[28].mxu1 %v1255_v54 }
 0x212   : > { %v985_v0 = vmul.f32 %v3234_v58, %v960_v63  ;;  %v886_v47 = vmul.f32 %v3263_v22, %v861_v62  ;;  %v837_v60 = vmul.f32 %v3276_v7, %v812_v45  ;;  %v790_v34 = vmul.f32 1.0614054, %v3327_v23  ;;  %2037 = vmatprep.mubr.msk.f32.mxu1 %vm2484_vm0, %v3556_v48  ;;  %v3577_v45 = vld [vmem:[#allocation23_spill] sm:$0xff] }
 0x213   : > { %v1208_v59 = vsel %vm1158_vm3, %v1133_v33, %v1183_v46  ;;  %v1134_v8 = vsub.f32 1.0, %v1109_v52  ;;  %v838_v25 = vmul.f32 %v3283_v16, %v813_v49  ;;  %v814_v56 = vadd.f32 -1.4531521, %v789_v61  ;;  %v3576_v33 = vld [vmem:[#allocation28_spill] sm:$0xff] }
 0x214   : > { %v1257_v32 = vmul.f32 %v1232_v3, %v3575_v10  ;;  %v1110_v58 = vmul.f32 %v3238_v26, %v985_v0  ;;  %v911_v29 = vadd.f32 -0.28449672, %v886_v47  ;;  %v862_v40 = vadd.f32 1.4214138, %v837_v60 }
 0x215   : > { %v1184_v21 = vsub.f32 0.0, %v1134_v8  ;;  %v863_v50 = vadd.f32 1.4214138, %v838_v25  ;;  %v839_v44 = vmul.f32 %v3296_v5, %v814_v56  ;;  %v815_v42 = vadd.f32 -1.4531521, %v790_v34  ;;  %2038 = vmatmul.mubr.f32.gmra.mrb[30].mxu1 %v1256_v38 }
 0x216   : > { %v1233_v17 = vadd.f32 1.0, %v1208_v59  ;;  %v1135_v13 = vsub.f32 1.0, %v1110_v58  ;;  %v936_v20 = vmul.f32 %v3263_v22, %v911_v29  ;;  %v887_v9 = vmul.f32 %v3276_v7, %v862_v40  ;;  %2040 = vmatprep.mubr.msk.f32.mxu1 %vm2484_vm0, %v3556_v48 }
 0x217   : > { %v1209_v26 = vsel %vm1159_vm4, %v1134_v8, %v1184_v21  ;;  %v888_v54 = vmul.f32 %v3283_v16, %v863_v50  ;;  %v864_v57 = vadd.f32 1.4214138, %v839_v44  ;;  %v840_v37 = vmul.f32 %v3327_v23, %v815_v42 }
 0x218   : > { %v1185_v30 = vsub.f32 0.0, %v1135_v13  ;;  %v961_v1 = vadd.f32 0.2548296, %v936_v20  ;;  %v912_v11 = vadd.f32 -0.28449672, %v887_v9  ;;  %2300 = vpow2.f32 %v1089_v24 }
 0x219   : > { %v913_v36 = vadd.f32 -0.28449672, %v888_v54  ;;  %v889_v28 = vmul.f32 %v3296_v5, %v864_v57  ;;  %v865_v3 = vadd.f32 1.4214138, %v840_v37  ;;  %2041 = vmatmul.mubr.f32.gmra.mrb[32].mxu1 %v1257_v32  ;;  %v1258_v15 = vmul.f32 %v1233_v17, %v3576_v33 }
 0x21a   : > { %v1234_v6 = vadd.f32 1.0, %v1209_v26  ;;  %v986_v2 = vmul.f32 %v3263_v22, %v961_v1  ;;  %v937_v38 = vmul.f32 %v3276_v7, %v912_v11  ;;  %2043 = vmatprep.mubr.msk.f32.mxu1 %vm2484_vm0, %v3556_v48  ;;  %v1210_v35 = vsel %vm1160_vm5, %v1135_v13, %v1185_v30  ;;  %v2299_v40 = vpop.eup %2298 }
 0x21b   : > { %v938_v24 = vmul.f32 %v3283_v16, %v913_v36  ;;  %v914_v63 = vadd.f32 -0.28449672, %v889_v28  ;;  %v890_v62 = vmul.f32 %v3327_v23, %v865_v3  ;;  %v609_v46 = vmul.f32 0.5, %v3577_v45 }
 0x21c   : > { %v1111_v52 = vmul.f32 %v3268_v31, %v986_v2  ;;  %v962_v49 = vadd.f32 0.2548296, %v937_v38  ;;  %v1235_v60 = vadd.f32 1.0, %v1210_v35  ;;  %v3578_v31 = vld [vmem:[#allocation27_spill] sm:$0xff]  ;;  %vm1161_vm6 = vcmp.ge.f32.partialorder %v3139_v51, 0.0  ;;  %v3579_v51 = vld [vmem:[#allocation30_spill] sm:$0xff] }
 0x21d   : > { %v963_v61 = vadd.f32 0.2548296, %v938_v24  ;;  %v939_v22 = vmul.f32 %v3296_v5, %v914_v63  ;;  %v915_v0 = vadd.f32 -0.28449672, %v890_v62  ;;  %2044 = vmatmul.mubr.f32.gmra.mrb[34].mxu1 %v1258_v15  ;;  %v1259_v47 = vmul.f32 %v1234_v6, %v609_v46 }
 0x21e   : > { %v1136_v34 = vsub.f32 1.0, %v1111_v52  ;;  %v987_v39 = vmul.f32 %v3276_v7, %v962_v49  ;;  %2046 = vmatprep.mubr.msk.f32.mxu1 %vm2484_vm0, %v3556_v48  ;;  %v610_v56 = vmul.f32 0.5, %v3578_v31  ;;  %v611_v20 = vmul.f32 0.5, %v3579_v51  ;;  %v1268_v52 = vld [vmem:[#allocation2 + $0x10] sm:$0xff] }
 0x21f   : > { %v988_v59 = vmul.f32 %v3283_v16, %v963_v61  ;;  %v964_v8 = vadd.f32 0.2548296, %v939_v22  ;;  %v940_v25 = vmul.f32 %v3327_v23, %v915_v0  ;;  %vm1162_vm7 = vcmp.ge.f32.partialorder %v3171_v4, 0.0  ;;  %v1269_v22 = vld [vmem:[#allocation2 + $0x18] sm:$0xff] }
 0x220   : > { %v1186_v10 = vsub.f32 0.0, %v1136_v34  ;;  %v1112_v32 = vmul.f32 %v3279_v41, %v987_v39  ;;  %v1260_v21 = vmul.f32 %v1235_v60, %v610_v56  ;;  %vm1163_vm8 = vcmp.ge.f32.partialorder %v3186_v18, 0.0  ;;  %v1270_v60 = vld [vmem:[#allocation2 + $0x20] sm:$0xff] }
 0x221   : > { %v1113_v58 = vmul.f32 %v3289_v14, %v988_v59  ;;  %v989_v29 = vmul.f32 %v3296_v5, %v964_v8  ;;  %v965_v7 = vadd.f32 0.2548296, %v940_v25  ;;  %2047 = vmatmul.mubr.f32.gmra.mrb[36].mxu1 %v1259_v47  ;;  %v612_v11 = vmul.f32 0.5, %v3161_v53  ;;  %v1271_v8 = vld [vmem:[#allocation2 + $0x28] sm:$0xff] }
 0x222   : > { %v1211_v50 = vsel %vm1161_vm6, %v1136_v34, %v1186_v10  ;;  %v1137_v16 = vsub.f32 1.0, %v1112_v32  ;;  %v2301_v44 = vpop.eup %2300  ;;  %2049 = vmatprep.mubr.msk.f32.mxu1 %vm2484_vm0, %v3556_v48  ;;  %vm1164_vm9 = vcmp.ge.f32.partialorder %v3215_v12, 0.0  ;;  %v613_v3 = vmul.f32 0.5, %v3178_v19  ;;  %v1272_v10 = vld [vmem:[#allocation2 + $0x30] sm:$0xff] }
 0x223   : > { %v1236_v42 = vadd.f32 1.0, %v1211_v50  ;;  %v1138_v17 = vsub.f32 1.0, %v1113_v58  ;;  %v1114_v13 = vmul.f32 %v2299_v40, %v989_v29  ;;  %v990_v41 = vmul.f32 %v3327_v23, %v965_v7  ;;  %v1273_v7 = vld [vmem:[#allocation2 + $0x38] sm:$0xff] }
 0x224   : > { %v1187_v14 = vsub.f32 0.0, %v1137_v16  ;;  %vm1165_vm10 = vcmp.ge.f32.partialorder %v3241_v55, 0.0  ;;  %v614_v12 = vmul.f32 0.5, %v3207_v43  ;;  %v615_v38 = vmul.f32 0.5, %v3222_v27  ;;  %v1266_v55 = vld [vmem:[#allocation2] sm:$0xff]  ;;  %v1267_v43 = vld [vmem:[#allocation2 + $0x8] sm:$0xff] }
 0x225   : > { %v1188_v5 = vsub.f32 0.0, %v1138_v17  ;;  %v1139_v9 = vsub.f32 1.0, %v1114_v13  ;;  %v1115_v26 = vmul.f32 %v2301_v44, %v990_v41  ;;  %2050 = vmatmul.mubr.f32.gmra.mrb[38].mxu1 %v1260_v21  ;;  %v1261_v54 = vmul.f32 %v1236_v42, %v611_v20  ;;  %v1275_v13 = vld [vmem:[#allocation2 + $0x48] sm:$0xff] }
 0x226   : > { %v1212_v57 = vsel %vm1162_vm7, %v1137_v16, %v1187_v14  ;;  %2052 = vmatprep.mubr.msk.f32.mxu1 %vm2484_vm0, %v3556_v48  ;;  %v1274_v16 = vld [vmem:[#allocation2 + $0x40] sm:$0xff]  ;;  %v1276_v14 = vld [vmem:[#allocation2 + $0x50] sm:$0xff] }
 0x227   : > { %v1237_v37 = vadd.f32 1.0, %v1212_v57  ;;  %v1213_v30 = vsel %vm1163_vm8, %v1138_v17, %v1188_v5  ;;  %v1189_v1 = vsub.f32 0.0, %v1139_v9  ;;  %v1140_v23 = vsub.f32 1.0, %v1115_v26 }
 0x228   : > { %v1238_v36 = vadd.f32 1.0, %v1213_v30 }
 0x229   : > { %2053 = vmatmul.mubr.f32.gmra.mrb[40].mxu1 %v1261_v54  ;;  %v1262_v4 = vmul.f32 %v1237_v37, %v612_v11  ;;  %v1214_v18 = vsel %vm1164_vm9, %v1139_v9, %v1189_v1  ;;  %v1190_v28 = vsub.f32 0.0, %v1140_v23  ;;  %v1277_v54 = vld [vmem:[#allocation2 + $0x58] sm:$0xff]  ;;  %v1278_v1 = vld [vmem:[#allocation2 + $0x60] sm:$0xff] }
 0x22a   : > { %2055 = vmatprep.mubr.msk.f32.mxu1 %vm2484_vm0, %v3556_v48  ;;  %v1263_v33 = vmul.f32 %v1238_v36, %v613_v3  ;;  %v1239_v15 = vadd.f32 1.0, %v1214_v18  ;;  %v1279_v36 = vld [vmem:[#allocation2 + $0x68] sm:$0xff] }
 0x22b   : > { %v1215_v53 = vsel %vm1165_vm10, %v1140_v23, %v1190_v28 }
 0x22c   : > { %v1264_v6 = vmul.f32 %v1239_v15, %v614_v12  ;;  %v1240_v2 = vadd.f32 1.0, %v1215_v53 }
 0x22d   : > { %2056 = vmatmul.mubr.f32.gmra.mrb[42].mxu1 %v1262_v4 }
 0x22e   : > { %2058 = vmatprep.mubr.msk.f32.mxu1 %vm2484_vm0, %v3556_v48  ;;  %v1265_v19 = vmul.f32 %v1240_v2, %v615_v38 }
 0x231   : > { %2059 = vmatmul.mubr.f32.gmra.mrb[44].mxu1 %v1263_v33  ;;  %v1280_v33 = vld [vmem:[#allocation2 + $0x70] sm:$0xff] }
 0x232   : > { %2061 = vmatprep.mubr.msk.f32.mxu1 %vm2484_vm0, %v3556_v48 }
 0x235   : > { %2062 = vmatmul.mubr.f32.gmra.mrb[46].mxu1 %v1264_v6  ;;  %v1281_v6 = vld [vmem:[#allocation2 + $0x78] sm:$0xff] }
 0x236   : > { %2064 = vmatprep.mubr.msk.f32.mxu1 %vm2484_vm0, %v3556_v48 }
 0x239   : > { %2065 = vmatmul.mubr.f32.gmra.mrb[48].mxu1 %v1265_v19 }
 0x27a   : > { %v1373_v35 = vpop.f32.mrb[0].mxu1 }
 0x27b   : > { %v1497_v24 = vadd.f32 %v1373_v35, %v1266_v55  ;;  %v1994_v63 = vpop.f32.mrb[1].mxu1  ;;  %v1282_v55 = vld [vmem:[#allocation2 + $0x80] sm:$0xff] }
 0x27d   : > { %1522 = vst [vmem:[#allocation2] sm:$0xff] %v1497_v24 }
 0x27e   : > { %v1378_v62 = vpop.f32.mrb[2].mxu1 }
 0x27f   : > { %v1498_v45 = vadd.f32 %v1378_v62, %v1267_v43  ;;  %v1997_v46 = vpop.f32.mrb[3].mxu1  ;;  %v1283_v43 = vld [vmem:[#allocation2 + $0x88] sm:$0xff] }
 0x281   : > { %1523 = vst [vmem:[#allocation2 + $0x8] sm:$0xff] %v1498_v45 }
 0x295   : > { %v1383_v49 = vpop.f32.mrb[4].mxu1 }
 0x296   : > { %v1499_v61 = vadd.f32 %v1383_v49, %v1268_v52  ;;  %v2000_v27 = vpop.f32.mrb[5].mxu1  ;;  %v1284_v52 = vld [vmem:[#allocation2 + $0x90] sm:$0xff] }
 0x298   : > { %1524 = vst [vmem:[#allocation2 + $0x10] sm:$0xff] %v1499_v61 }
 0x29c   : > { %v1388_v0 = vpop.f32.mrb[6].mxu1 }
 0x29d   : > { %v1500_v47 = vadd.f32 %v1388_v0, %v1269_v22  ;;  %v2003_v48 = vpop.f32.mrb[7].mxu1  ;;  %v1285_v22 = vld [vmem:[#allocation2 + $0x98] sm:$0xff] }
 0x29f   : > { %1525 = vst [vmem:[#allocation2 + $0x18] sm:$0xff] %v1500_v47 }
 0x2a8   : > { %v1393_v34 = vpop.f32.mrb[8].mxu1 }
 0x2a9   : > { %v1501_v39 = vadd.f32 %v1393_v34, %v1270_v60  ;;  %v2006_v59 = vpop.f32.mrb[9].mxu1  ;;  %v1286_v60 = vld [vmem:[#allocation2 + $0xa0] sm:$0xff] }
 0x2ab   : > { %1526 = vst [vmem:[#allocation2 + $0x20] sm:$0xff] %v1501_v39 }
 0x2ac   : > { %v1398_v25 = vpop.f32.mrb[10].mxu1 }
 0x2ad   : > { %v1502_v31 = vadd.f32 %v1398_v25, %v1271_v8  ;;  %v2009_v56 = vpop.f32.mrb[11].mxu1  ;;  %v1287_v8 = vld [vmem:[#allocation2 + $0xa8] sm:$0xff] }
 0x2af   : > { %1527 = vst [vmem:[#allocation2 + $0x28] sm:$0xff] %v1502_v31 }
 0x2b3   : > { %v1403_v32 = vpop.f32.mrb[12].mxu1 }
 0x2b4   : > { %v1503_v58 = vadd.f32 %v1403_v32, %v1272_v10  ;;  %v2012_v29 = vpop.f32.mrb[13].mxu1  ;;  %v1288_v10 = vld [vmem:[#allocation2 + $0xb0] sm:$0xff] }
 0x2b6   : > { %1528 = vst [vmem:[#allocation2 + $0x30] sm:$0xff] %v1503_v58 }
 0x2b7   : > { %v1408_v40 = vpop.f32.mrb[14].mxu1 }
 0x2b8   : > { %v1504_v21 = vadd.f32 %v1408_v40, %v1273_v7  ;;  %v2015_v50 = vpop.f32.mrb[15].mxu1  ;;  %v1289_v7 = vld [vmem:[#allocation2 + $0xb8] sm:$0xff] }
 0x2ba   : > { %1529 = vst [vmem:[#allocation2 + $0x38] sm:$0xff] %v1504_v21 }
 0x2be   : > { %v1413_v44 = vpop.f32.mrb[16].mxu1 }
 0x2bf   : > { %v1505_v42 = vadd.f32 %v1413_v44, %v1274_v16  ;;  %v2018_v17 = vpop.f32.mrb[17].mxu1  ;;  %v1290_v16 = vld [vmem:[#allocation2 + $0xc0] sm:$0xff] }
 0x2c1   : > { %1530 = vst [vmem:[#allocation2 + $0x40] sm:$0xff] %v1505_v42 }
 0x2c5   : > { %v1418_v41 = vpop.f32.mrb[18].mxu1 }
 0x2c6   : > { %v1506_v51 = vadd.f32 %v1418_v41, %v1275_v13  ;;  %v2021_v20 = vpop.f32.mrb[19].mxu1  ;;  %v1551_v13 = vld [vmem:[#allocation2] sm:$0xff] (!%p1764_p1) }
 0x2c7   : > { %v3438_v41 = vld [vmem:[%s3510_s4] ss:$0 sm:$0xff] (!%p1764_p1) }
 0x2c8   : > { %1531 = vst [vmem:[#allocation2 + $0x48] sm:$0xff] %v1506_v51  ;;  %v1552_v51 = vld [vmem:[#allocation2 + $0x8] sm:$0xff] (!%p1764_p1)  ;;  %v1583_v20 = vadd.f32 (!%p1764_p1), %v3438_v41, %v1551_v13 }
 0x2ca   : > { %1608 = vst [vmem:[#allocation9] sm:$0xff] (!%p1764_p1), %v1583_v20 }
 0x2ce   : > { %v1423_v5 = vpop.f32.mrb[20].mxu1 }
 0x2cf   : > { %v1507_v9 = vadd.f32 %v1423_v5, %v1276_v14  ;;  %v2024_v26 = vpop.f32.mrb[21].mxu1  ;;  %v1584_v14 = vadd.f32 (!%p1764_p1), %v3438_v41, %v1552_v51  ;;  %v1553_v5 = vld [vmem:[#allocation2 + $0x10] sm:$0xff] (!%p1764_p1) }
 0x2d0   : > { %v1555_v26 = vld [vmem:[#allocation2 + $0x20] sm:$0xff] (!%p1764_p1) }
 0x2d1   : > { %1532 = vst [vmem:[#allocation2 + $0x50] sm:$0xff] %v1507_v9  ;;  %v1554_v9 = vld [vmem:[#allocation2 + $0x18] sm:$0xff] (!%p1764_p1)  ;;  %1609 = vst [vmem:[#allocation9 + $0x8] sm:$0xff] (!%p1764_p1), %v1584_v14 }
 0x2d2   : > { %v1428_v57 = vpop.f32.mrb[22].mxu1 }
 0x2d3   : > { %v1508_v37 = vadd.f32 %v1428_v57, %v1277_v54  ;;  %v2027_v30 = vpop.f32.mrb[23].mxu1  ;;  %v1585_v54 = vadd.f32 (!%p1764_p1), %v3438_v41, %v1553_v5  ;;  %v1586_v57 = vadd.f32 (!%p1764_p1), %v3438_v41, %v1554_v9 }
 0x2d4   : > { %v1556_v30 = vld [vmem:[#allocation2 + $0x28] sm:$0xff] (!%p1764_p1) }
 0x2d5   : > { %1533 = vst [vmem:[#allocation2 + $0x58] sm:$0xff] %v1508_v37  ;;  %v1587_v37 = vadd.f32 (!%p1764_p1), %v3438_v41, %v1555_v26  ;;  %1610 = vst [vmem:[#allocation9 + $0x10] sm:$0xff] (!%p1764_p1), %v1585_v54 }
 0x2d6   : > { %1611 = vst [vmem:[#allocation9 + $0x18] sm:$0xff] (!%p1764_p1), %v1586_v57 }
 0x2d7   : > { %1612 = vst [vmem:[#allocation9 + $0x20] sm:$0xff] (!%p1764_p1), %v1587_v37 }
 0x2da   : > { %v1433_v23 = vpop.f32.mrb[24].mxu1 }
 0x2db   : > { %v1509_v11 = vadd.f32 %v1433_v23, %v1278_v1  ;;  %v2030_v4 = vpop.f32.mrb[25].mxu1  ;;  %v1557_v1 = vld [vmem:[#allocation2 + $0x30] sm:$0xff] (!%p1764_p1)  ;;  %v1558_v23 = vld [vmem:[#allocation2 + $0x38] sm:$0xff] (!%p1764_p1) }
 0x2dc   : > { %v1589_v4 = vadd.f32 (!%p1764_p1), %v3438_v41, %v1557_v1 }
 0x2dd   : > { %1534 = vst [vmem:[#allocation2 + $0x60] sm:$0xff] %v1509_v11  ;;  %v1588_v11 = vadd.f32 (!%p1764_p1), %v3438_v41, %v1556_v30 }
 0x2de   : > { %1614 = vst [vmem:[#allocation9 + $0x30] sm:$0xff] (!%p1764_p1), %v1589_v4 }
 0x2df   : > { %1613 = vst [vmem:[#allocation9 + $0x28] sm:$0xff] (!%p1764_p1), %v1588_v11 }
 0x2e0   : > { %v1438_v18 = vpop.f32.mrb[26].mxu1 }
 0x2e1   : > { %v1510_v28 = vadd.f32 %v1438_v18, %v1279_v36  ;;  %v2033_v3 = vpop.f32.mrb[27].mxu1  ;;  %v1590_v36 = vadd.f32 (!%p1764_p1), %v3438_v41, %v1558_v23  ;;  %v1559_v18 = vld [vmem:[#allocation2 + $0x40] sm:$0xff] (!%p1764_p1) }
 0x2e2   : > { %v1561_v3 = vld [vmem:[#allocation2 + $0x50] sm:$0xff] (!%p1764_p1) }
 0x2e3   : > { %1535 = vst [vmem:[#allocation2 + $0x68] sm:$0xff] %v1510_v28  ;;  %v1560_v28 = vld [vmem:[#allocation2 + $0x48] sm:$0xff] (!%p1764_p1)  ;;  %1615 = vst [vmem:[#allocation9 + $0x38] sm:$0xff] (!%p1764_p1), %v1590_v36 }
 0x2e4   : > { %v1443_v15 = vpop.f32.mrb[28].mxu1 }
 0x2e5   : > { %v1511_v53 = vadd.f32 %v1443_v15, %v1280_v33  ;;  %v2036_v12 = vpop.f32.mrb[29].mxu1  ;;  %v1591_v33 = vadd.f32 (!%p1764_p1), %v3438_v41, %v1559_v18  ;;  %v1592_v15 = vadd.f32 (!%p1764_p1), %v3438_v41, %v1560_v28 }
 0x2e6   : > { %v1562_v12 = vld [vmem:[#allocation2 + $0x58] sm:$0xff] (!%p1764_p1) }
 0x2e7   : > { %1536 = vst [vmem:[#allocation2 + $0x70] sm:$0xff] %v1511_v53  ;;  %v1593_v53 = vadd.f32 (!%p1764_p1), %v3438_v41, %v1561_v3  ;;  %1616 = vst [vmem:[#allocation9 + $0x40] sm:$0xff] (!%p1764_p1), %v1591_v33 }
 0x2e8   : > { %v1448_v2 = vpop.f32.mrb[30].mxu1  ;;  %1617 = vst [vmem:[#allocation9 + $0x48] sm:$0xff] (!%p1764_p1), %v1592_v15 }
 0x2e9   : > { %v1512_v38 = vadd.f32 %v1448_v2, %v1281_v6  ;;  %v2039_v19 = vpop.f32.mrb[31].mxu1  ;;  %v1563_v6 = vld [vmem:[#allocation2 + $0x60] sm:$0xff] (!%p1764_p1)  ;;  %1618 = vst [vmem:[#allocation9 + $0x50] sm:$0xff] (!%p1764_p1), %v1593_v53 }
 0x2ea   : > { %v1564_v2 = vld [vmem:[#allocation2 + $0x68] sm:$0xff] (!%p1764_p1)  ;;  %v1595_v19 = vadd.f32 (!%p1764_p1), %v3438_v41, %v1563_v6 }
 0x2eb   : > { %1537 = vst [vmem:[#allocation2 + $0x78] sm:$0xff] %v1512_v38  ;;  %v1594_v38 = vadd.f32 (!%p1764_p1), %v3438_v41, %v1562_v12 }
 0x2ec   : > { %v1453_v35 = vpop.f32.mrb[32].mxu1  ;;  %1620 = vst [vmem:[#allocation9 + $0x60] sm:$0xff] (!%p1764_p1), %v1595_v19 }
 0x2ed   : > { %v1513_v24 = vadd.f32 %v1453_v35, %v1282_v55  ;;  %v2042_v63 = vpop.f32.mrb[33].mxu1  ;;  %v1596_v55 = vadd.f32 (!%p1764_p1), %v3438_v41, %v1564_v2  ;;  %1619 = vst [vmem:[#allocation9 + $0x58] sm:$0xff] (!%p1764_p1), %v1594_v38 }
 0x2ee   : > { %v1565_v35 = vld [vmem:[#allocation2 + $0x70] sm:$0xff] (!%p1764_p1) }
 0x2ef   : > { %1538 = vst [vmem:[#allocation2 + $0x80] sm:$0xff] %v1513_v24  ;;  %1621 = vst [vmem:[#allocation9 + $0x68] sm:$0xff] (!%p1764_p1), %v1596_v55 }
 0x2f0   : > { %v1458_v62 = vpop.f32.mrb[34].mxu1 }
 0x2f1   : > { %v1514_v45 = vadd.f32 %v1458_v62, %v1283_v43  ;;  %v2045_v46 = vpop.f32.mrb[35].mxu1  ;;  %v1597_v43 = vadd.f32 (!%p1764_p1), %v3438_v41, %v1565_v35 }
 0x2f2   : > { %v1566_v24 = vld [vmem:[#allocation2 + $0x78] sm:$0xff] (!%p1764_p1) }
 0x2f3   : > { %1539 = vst [vmem:[#allocation2 + $0x88] sm:$0xff] %v1514_v45  ;;  %v1598_v62 = vadd.f32 (!%p1764_p1), %v3438_v41, %v1566_v24  ;;  %1622 = vst [vmem:[#allocation9 + $0x70] sm:$0xff] (!%p1764_p1), %v1597_v43 }
 0x2f4   : > { %v1463_v49 = vpop.f32.mrb[36].mxu1 }
 0x2f5   : > { %v1515_v61 = vadd.f32 %v1463_v49, %v1284_v52  ;;  %v2048_v27 = vpop.f32.mrb[37].mxu1  ;;  %1623 = vst [vmem:[#allocation9 + $0x78] sm:$0xff] (!%p1764_p1), %v1598_v62 }
 0x2f6   : > { %v1567_v63 = vld [vmem:[#allocation2 + $0x80] sm:$0xff] (!%p1764_p1) }
 0x2f7   : > { %1540 = vst [vmem:[#allocation2 + $0x90] sm:$0xff] %v1515_v61  ;;  %v1599_v45 = vadd.f32 (!%p1764_p1), %v3438_v41, %v1567_v63 }
 0x2f8   : > { %v1468_v0 = vpop.f32.mrb[38].mxu1 }
 0x2f9   : > { %v1516_v47 = vadd.f32 %v1468_v0, %v1285_v22  ;;  %v2051_v48 = vpop.f32.mrb[39].mxu1  ;;  %1624 = vst [vmem:[#allocation9 + $0x80] sm:$0xff] (!%p1764_p1), %v1599_v45 }
 0x2fa   : > { %v1568_v46 = vld [vmem:[#allocation2 + $0x88] sm:$0xff] (!%p1764_p1) }
 0x2fb   : > { %1541 = vst [vmem:[#allocation2 + $0x98] sm:$0xff] %v1516_v47  ;;  %v1600_v61 = vadd.f32 (!%p1764_p1), %v3438_v41, %v1568_v46 }
 0x2fc   : > { %v1473_v34 = vpop.f32.mrb[40].mxu1 }
 0x2fd   : > { %v1517_v39 = vadd.f32 %v1473_v34, %v1286_v60  ;;  %v2054_v59 = vpop.f32.mrb[41].mxu1  ;;  %1625 = vst [vmem:[#allocation9 + $0x88] sm:$0xff] (!%p1764_p1), %v1600_v61 }
 0x2fe   : > { %v1569_v52 = vld [vmem:[#allocation2 + $0x90] sm:$0xff] (!%p1764_p1) }
 0x2ff   : > { %1542 = vst [vmem:[#allocation2 + $0xa0] sm:$0xff] %v1517_v39  ;;  %v1601_v27 = vadd.f32 (!%p1764_p1), %v3438_v41, %v1569_v52 }
 0x300   : > { %v1478_v25 = vpop.f32.mrb[42].mxu1 }
 0x301   : > { %v1518_v31 = vadd.f32 %v1478_v25, %v1287_v8  ;;  %v2057_v56 = vpop.f32.mrb[43].mxu1  ;;  %1626 = vst [vmem:[#allocation9 + $0x90] sm:$0xff] (!%p1764_p1), %v1601_v27 }
 0x302   : > { %v1570_v49 = vld [vmem:[#allocation2 + $0x98] sm:$0xff] (!%p1764_p1) }
 0x303   : > { %1543 = vst [vmem:[#allocation2 + $0xa8] sm:$0xff] %v1518_v31  ;;  %v1602_v22 = vadd.f32 (!%p1764_p1), %v3438_v41, %v1570_v49 }
 0x304   : > { %v1483_v32 = vpop.f32.mrb[44].mxu1 }
 0x305   : > { %v1519_v58 = vadd.f32 %v1483_v32, %v1288_v10  ;;  %v2060_v29 = vpop.f32.mrb[45].mxu1  ;;  %1627 = vst [vmem:[#allocation9 + $0x98] sm:$0xff] (!%p1764_p1), %v1602_v22 }
 0x306   : > { %v1571_v0 = vld [vmem:[#allocation2 + $0xa0] sm:$0xff] (!%p1764_p1) }
 0x307   : > { %1544 = vst [vmem:[#allocation2 + $0xb0] sm:$0xff] %v1519_v58  ;;  %v1603_v60 = vadd.f32 (!%p1764_p1), %v3438_v41, %v1571_v0 }
 0x308   : > { %v1488_v40 = vpop.f32.mrb[46].mxu1 }
 0x309   : > { %v1520_v21 = vadd.f32 %v1488_v40, %v1289_v7  ;;  %v2063_v50 = vpop.f32.mrb[47].mxu1  ;;  %1550 = sbr.rel (%p1764_p1) target bundleno = 794 (0x31a), region = 60  ;;  %1628 = vst [vmem:[#allocation9 + $0xa0] sm:$0xff] (!%p1764_p1), %v1603_v60 }
 0x30a   : > { %v1572_v47 = vld [vmem:[#allocation2 + $0xa8] sm:$0xff] (!%p1764_p1) }
 0x30b   : > { %1545 = vst [vmem:[#allocation2 + $0xb8] sm:$0xff] %v1520_v21  ;;  %v1604_v34 = vadd.f32 (!%p1764_p1), %v3438_v41, %v1572_v47 }
 0x30c   : > { %v1493_v44 = vpop.f32.mrb[48].mxu1 }
 0x30d   : > { %v1521_v42 = vadd.f32 %v1493_v44, %v1290_v16  ;;  %v2066_v17 = vpop.f32.mrb[49].mxu1  ;;  %1629 = vst [vmem:[#allocation9 + $0xa8] sm:$0xff] (!%p1764_p1), %v1604_v34 }
 0x30e   : > { %v1573_v48 = vld [vmem:[#allocation2 + $0xb0] sm:$0xff] (!%p1764_p1) }
 0x30f   : > { %1546 = vst [vmem:[#allocation2 + $0xc0] sm:$0xff] %v1521_v42  ;;  %v1605_v39 = vadd.f32 (!%p1764_p1), %v3438_v41, %v1573_v48 }
 0x311   : > { %1630 = vst [vmem:[#allocation9 + $0xb0] sm:$0xff] %v1605_v39 }
 0x312   : > { %v1574_v59 = vld [vmem:[#allocation2 + $0xb8] sm:$0xff] }
 0x313   : > { %v1606_v25 = vadd.f32 %v3438_v41, %v1574_v59 }
 0x315   : > { %1631 = vst [vmem:[#allocation9 + $0xb8] sm:$0xff] %v1606_v25 }
 0x316   : > { %v1575_v8 = vld [vmem:[#allocation2 + $0xc0] sm:$0xff] }
 0x317   : > { %v1607_v31 = vadd.f32 %v3438_v41, %v1575_v8 }
 0x319   : > { %1632 = vst [vmem:[#allocation9 + $0xc0] sm:$0xff] %v1607_v31 }
 0x31a PF: > { %p2141_p6 = scmp.eq.s32.totalorder %s2616_s16, 1  ;;  %s2486_s21 = smov [#allocation9]  }
 0x31b   : > { %s1642_s14 = sshll.u32 %s2486_s21, 4  ;;  %s1643_s14 = int_to_ptr.vmem [resolvable:$true] %s1642_s14 }
 0x31c   : > { %s2390_s28 = scalar_lea.vmem %s1643_s14, 3200  ;;  %p2397_p12 = scmp.lt.s32.totalorder %s1643_s14, %s1643_s14 }
 0x31d   : > { %p2391_p4 = scmp.ne.s32.totalorder %s1643_s14, %s2390_s28  ;;  %p2398_p10 = scmp.lt.s32.totalorder %s2390_s28, %s2390_s28 }
 0x31f   : > { %p2392_p7 = pnand %p2391_p4, %p2141_p6  ;;  %p2399_p0 = por %p2398_p10, %p2397_p12 }
 0x321   : > { %p2393_p9 = pneg %p2392_p7 }
 0x323   : > { %p2400_p8 = pnand %p2399_p0, %p2393_p9 }
 0x325   : > { %2403 = shalt.err (!%p2400_p8)
}
 0x326   : > { %s2404_s27 = scalar_lea.hbm %s3511_s5, 3200 }
 0x327   : > { %p2405_p13 = scmp.ne.s32.totalorder %s3511_s5, %s2404_s27  ;;  %p2410_p5 = scmp.lt.u32.totalorder %s2404_s27, %s3511_s5 }
 0x329   : > { %p2406_p2 = pnand %p2405_p13, %p2141_p6 }
 0x32b   : > { %p2407_p3 = pneg %p2406_p2 }
 0x32d   : > { %p2412_p11 = pnand %p2410_p5, %p2407_p3 }
 0x32f   : > { %2415 = shalt.err (!%p2412_p11)
}
 0x330   : > { %s2487_s15 = smov 128   ;;  %s2488_s25 = smov 8  }
 0x331   : > { %2124 = dma.vmem_to_hbm [thread:$0]  (%p2141_p6), %s1643_s14, 3200, %s3511_s5, [#allocation5], %s2487_s15, %s2487_s15, %s2488_s25  }
 0x332   : > { %2449 = dma.done.wait (%p2141_p6), [#allocation5], 3200  }
 0x333   : > { %2451 = vsyncadd (%p2141_p6), [#allocation5], 4294964096 }
 0x334 PF: > { %s20_s23 = sadd.s32 1, %s2474_s23   ;;  %s3580_s18 = smov %s2458_s19 }
 0x335   : > { %p17_p1 = scmp.ge.s32.totalorder %s20_s23, 4   ;;  %s3581_s19 = smov %s2462_s20 }
 0x336   : > { %s3582_s20 = smov %s2566_s30  ;;  %s3583_s21 = smov %s2470_s22 }
 0x337   : > { %s3584_s22 = smov %s3586_s24  ;;  %19 = sbr.rel (!%p17_p1) target bundleno = 6 (0x6), region = 106 }
 0x33e   :  { %1658 = vsyncpa [#allocation4], 1 }
 0x33f   :  { %1660 = vsyncpa [#allocation4 + $0x1], 1 }
 0x340   :  { %1661 = vsyncpa [#allocation7], 1 }
 0x341   :  { %1663 = vsyncpa [#allocation7 + $0x1], 1 }
 0x342   :  { %1664 = vsyncpa [#allocation5], 1 }
 0x343   :  { %1666 = vsyncpa [#allocation5 + $0x1], 1 }

</bundles_post_ra>
